<compile_context>
chip_gen: v5e
topology: v5e:2x2
jax: 0.10.0
libtpu: 0.0.40
codegen_flags: <defaults>
</compile_context>

<pallas_src>
import functools

import jax
import jax.numpy as jnp
from jax import lax
from jax.experimental import pallas as pl
from jax.experimental.pallas import tpu as pltpu


def _mha_kernel(xq_ref, xkv_ref, wq_ref, bq_ref, wkv_ref, bkv_ref, wo_ref, bo_ref,
                out_ref, kv_ref, attn_ref, *, num_heads: int, head_dim: int,
                embed_dim: int):
    E = embed_dim
    Dh = head_dim

    # ---- fused K/V in-projection, once per batch element (q-tile 0) ----
    @pl.when(pl.program_id(1) == 0)
    def _():
        kv = jnp.dot(xkv_ref[...], wkv_ref[...],
                     preferred_element_type=jnp.float32) + bkv_ref[...]
        kv_ref[...] = kv.astype(kv_ref.dtype)          # (T, 2E), input dtype

    # ---- Q in-projection for this query tile (scaling pre-folded) ----
    xq = xq_ref[...]                                   # (Tq, E), input dtype
    q = jnp.dot(xq, wq_ref[...],
                preferred_element_type=jnp.float32) + bq_ref[...]
    q = q.astype(xq.dtype)                             # (Tq, E)
    kv = kv_ref[...]                                   # (T, 2E)

    # ---- per-head attention; heads unrolled inside one grid step ----
    for h in range(num_heads):
        qh = q[:, h * Dh:(h + 1) * Dh]                 # (Tq, Dh)
        kh = kv[:, h * Dh:(h + 1) * Dh]                # (T, Dh)
        vh = kv[:, E + h * Dh:E + (h + 1) * Dh]        # (T, Dh)

        # scores: q @ k^T, contracting last dims (no explicit transpose)
        s = lax.dot_general(qh, kh, (((1,), (1,)), ((), ())),
                            preferred_element_type=jnp.float32)   # (Tq, T) f32

        # softmax with deferred normalization (f32 statistics)
        m = jnp.max(s, axis=-1, keepdims=True)
        p = jnp.exp(s - m)
        l = jnp.sum(p, axis=-1, keepdims=True)

        ah = jnp.dot(p.astype(vh.dtype), vh,
                     preferred_element_type=jnp.float32)          # (Tq, Dh)
        ah = ah * pl.reciprocal(l, approx=False)       # O(Tq*Dh) scale, not O(Tq*T)
        # TODO(synk): attention dropout on the probabilities omitted (eval mode).

        # concat heads by writing into the column slab of the attn scratch
        attn_ref[:, h * Dh:(h + 1) * Dh] = ah.astype(attn_ref.dtype)

    # ---- single full-width output projection for this query tile ----
    out = jnp.dot(attn_ref[...], wo_ref[...],
                  preferred_element_type=jnp.float32) + bo_ref[...]
    out_ref[...] = out.astype(out_ref.dtype)


def _pick_q_tile(T: int) -> int:
    """Query-tile length: full T for short sequences, else a divisor <= 256."""
    if T <= 256:
        return T
    for tq in (256, 128, 64, 32, 16, 8):
        if T % tq == 0:
            return tq
    return T  # fallback: no tiling


def multihead_attention(query, params, *, num_heads: int):
    """query: (T, B, E). Returns attn output (T, B, E).

    params: in_proj_weight (3E, E), in_proj_bias (3E,), out_w (E, E), out_b (E,).
    """
    T, B, E = query.shape
    H = num_heads
    Dh = E // H
    assert Dh * H == E, "embed_dim must be divisible by num_heads"
    scaling = float(Dh) ** -0.5
    dtype = query.dtype

    # Batch-major layout so each grid step gets lane-dense (Tq, E) slabs.
    x = jnp.transpose(query, (1, 0, 2))                      # (B, T, E)

    w_in = params["in_proj_weight"]                          # (3E, E)
    b_in = params["in_proj_bias"]                            # (3E,)

    # F.linear: y = x @ W^T + b. Pre-transpose once; fold the 1/sqrt(Dh)
    # scaling into the Q projection weights/bias.
    w_t = jnp.transpose(w_in, (1, 0))                        # (E, 3E): [q | k | v]
    wq_t = w_t[:, :E] * scaling                              # (E, E)
    wkv_t = w_t[:, E:]                                       # (E, 2E)
    bq = (b_in[:E] * scaling).reshape(1, E)
    bkv = b_in[E:].reshape(1, 2 * E)

    wo_t = jnp.transpose(params["out_w"], (1, 0))            # (E, E) = Wo^T
    bo = params["out_b"].reshape(1, E)

    TQ = _pick_q_tile(T)
    nqt = T // TQ

    kernel = functools.partial(_mha_kernel, num_heads=H, head_dim=Dh, embed_dim=E)

    const2d = lambda b, qt: (0, 0)                           # VMEM-resident weights

    out = pl.pallas_call(
        kernel,
        out_shape=jax.ShapeDtypeStruct((B, T, E), dtype),
        grid_spec=pltpu.PrefetchScalarGridSpec(
            num_scalar_prefetch=0,
            grid=(B, nqt),
            in_specs=[
                pl.BlockSpec((pl.Squeezed(), TQ, E), lambda b, qt: (b, qt, 0)),  # x (q tile)
                pl.BlockSpec((pl.Squeezed(), T, E), lambda b, qt: (b, 0, 0)),    # x (full, K/V)
                pl.BlockSpec((E, E), const2d),        # Wq^T * s   (resident)
                pl.BlockSpec((1, E), const2d),        # bq * s     (resident)
                pl.BlockSpec((E, 2 * E), const2d),    # Wkv^T      (resident)
                pl.BlockSpec((1, 2 * E), const2d),    # bkv        (resident)
                pl.BlockSpec((E, E), const2d),        # Wo^T       (resident)
                pl.BlockSpec((1, E), const2d),        # bo         (resident)
            ],
            out_specs=pl.BlockSpec((pl.Squeezed(), TQ, E), lambda b, qt: (b, qt, 0)),
            scratch_shapes=[
                pltpu.VMEM((T, 2 * E), dtype),        # fused K/V (resident per batch)
                pltpu.VMEM((TQ, E), dtype),           # concatenated head outputs
            ],
        ),
        compiler_params=pltpu.CompilerParams(
            dimension_semantics=("parallel", "arbitrary")),
    )(x, x, wq_t, bq, wkv_t, bkv, wo_t, bo)

    return jnp.transpose(out, (1, 0, 2))                     # back to (T, B, E)


def _reference(query, params, *, num_heads: int):
    """Pure-JAX reference mirroring the PyTorch forward (attn output only)."""
    T, B, E = query.shape
    H = num_heads
    Dh = E // H
    scaling = float(Dh) ** -0.5

    w = params["in_proj_weight"]
    b = params["in_proj_bias"]
    qkv = jnp.einsum("tbe,fe->tbf", query, w) + b            # (T, B, 3E)
    q, k, v = jnp.split(qkv, 3, axis=-1)
    q = q * scaling

    def split_heads(t):                                      # (T,B,E)->(B*H,T,Dh)
        return t.reshape(T, B * H, Dh).transpose(1, 0, 2)

    q, k, v = map(split_heads, (q, k, v))
    attn_w = jnp.einsum("btd,bsd->bts", q, k)
    attn_w = jax.nn.softmax(attn_w, axis=-1)
    attn = jnp.einsum("bts,bsd->btd", attn_w, v)             # (B*H, T, Dh)
    attn = attn.transpose(1, 0, 2).reshape(T, B, E)
    return jnp.einsum("tbe,oe->tbo", attn, params["out_w"]) + params["out_b"]


if __name__ == "__main__":
    jax.config.update("jax_default_matmul_precision", "highest")

    # Small shapes consistent with the module: tgt_len=16, batch=2, embed_dim=32,
    # num_heads=4 (head_dim=8), self-attention, bias=True, dropout=0 (eval).
    T, B, E, H = 16, 2, 32, 4

    key = jax.random.PRNGKey(0)
    kq, kw, kb, kow, kob = jax.random.split(key, 5)

    query = jax.random.normal(kq, (T, B, E), dtype=jnp.float32)
    params = {
        "in_proj_weight": jax.random.normal(kw, (3 * E, E), jnp.float32)
                          * (1.0 / jnp.sqrt(E)),
        "in_proj_bias": 0.1 * jax.random.normal(kb, (3 * E,), jnp.float32),
        "out_w": jax.random.normal(kow, (E, E), jnp.float32) * (1.0 / jnp.sqrt(E)),
        "out_b": 0.1 * jax.random.normal(kob, (E,), jnp.float32),
    }

    out = multihead_attention(query, params, num_heads=H)
    out = jax.block_until_ready(out)

    ref = _reference(query, params, num_heads=H)
    assert out.shape == (T, B, E)
    err = float(jnp.max(jnp.abs(out - ref)))
    assert jnp.allclose(out, ref, atol=1e-4, rtol=1e-4), (
        f"mismatch vs reference: max abs err {err:.3e}")
    print("KERNEL_OK")
</pallas_src>

<mosaic_0001>
module attributes {stable_mosaic.version = 11 : i64} {
  func.func @_mha_kernel(%arg0: i32, %arg1: i32, %arg2: memref<1x16x32xf32, #tpu.memory_space<vmem>>, %arg3: memref<1x16x32xf32, #tpu.memory_space<vmem>>, %arg4: memref<32x32xf32, #tpu.memory_space<vmem>>, %arg5: memref<1x32xf32, #tpu.memory_space<vmem>>, %arg6: memref<32x64xf32, #tpu.memory_space<vmem>>, %arg7: memref<1x64xf32, #tpu.memory_space<vmem>>, %arg8: memref<32x32xf32, #tpu.memory_space<vmem>>, %arg9: memref<1x32xf32, #tpu.memory_space<vmem>>, %arg10: memref<1x16x32xf32, #tpu.memory_space<vmem>>, %arg11: memref<16x64xf32, #tpu.memory_space<vmem>>, %arg12: memref<16x32xf32, #tpu.memory_space<vmem>>) attributes {dimension_semantics = [#tpu.dimension_semantics<parallel>, #tpu.dimension_semantics<arbitrary>], iteration_bounds = array<i64: 2, 1>, scalar_prefetch = 0 : i64, scratch_operands = 2 : i64, tpu.core_type = #tpu.core_type<tc>, window_params = [{transform_indices = @transform_0, window_bounds = array<i64: 1, 16, 32>}, {transform_indices = @transform_1, window_bounds = array<i64: 1, 16, 32>}, {pipeline_mode = #tpu.pipeline_mode<synchronous>, transform_indices = @transform_2, window_bounds = array<i64: 32, 32>}, {pipeline_mode = #tpu.pipeline_mode<synchronous>, transform_indices = @transform_3, window_bounds = array<i64: 1, 32>}, {pipeline_mode = #tpu.pipeline_mode<synchronous>, transform_indices = @transform_4, window_bounds = array<i64: 32, 64>}, {pipeline_mode = #tpu.pipeline_mode<synchronous>, transform_indices = @transform_5, window_bounds = array<i64: 1, 64>}, {pipeline_mode = #tpu.pipeline_mode<synchronous>, transform_indices = @transform_6, window_bounds = array<i64: 32, 32>}, {pipeline_mode = #tpu.pipeline_mode<synchronous>, transform_indices = @transform_7, window_bounds = array<i64: 1, 32>}, {transform_indices = @transform_8, window_bounds = array<i64: 1, 16, 32>}]} {
    %c0_i32 = arith.constant 0 : i32
    %0 = arith.cmpi eq, %arg1, %c0_i32 : i32
    %1 = arith.extui %0 : i1 to i32
    %c0_i32_0 = arith.constant 0 : i32
    %2 = arith.cmpi ne, %1, %c0_i32_0 : i32
    scf.if %2 {
      %c0_40 = arith.constant 0 : index
      %c0_41 = arith.constant 0 : index
      %c0_42 = arith.constant 0 : index
      %84 = vector.load %arg3[%c0_40, %c0_41, %c0_42] : memref<1x16x32xf32, #tpu.memory_space<vmem>>, vector<1x16x32xf32>
      %85 = vector.shape_cast %84 : vector<1x16x32xf32> to vector<16x32xf32>
      %c0_43 = arith.constant 0 : index
      %c0_44 = arith.constant 0 : index
      %86 = vector.load %arg6[%c0_43, %c0_44] : memref<32x64xf32, #tpu.memory_space<vmem>>, vector<32x64xf32>
      %cst_45 = arith.constant dense<0.000000e+00> : vector<16x64xf32>
      %87 = tpu.matmul %85, %86, %cst_45 {dimension_numbers = #tpu.dot_dimension_numbers<[1], [0], [0], [1], [0, 0, 1, 1], [], []>, precision = #tpu.contract_precision<fp32>} : vector<16x32xf32>, vector<32x64xf32>, vector<16x64xf32> -> vector<16x64xf32>
      %c0_46 = arith.constant 0 : index
      %c0_47 = arith.constant 0 : index
      %88 = vector.load %arg7[%c0_46, %c0_47] : memref<1x64xf32, #tpu.memory_space<vmem>>, vector<1x64xf32>
      %89 = vector.broadcast %88 : vector<1x64xf32> to vector<16x64xf32>
      %90 = arith.addf %87, %89 : vector<16x64xf32>
      %c0_48 = arith.constant 0 : index
      %c0_49 = arith.constant 0 : index
      %91 = vector.load %arg11[%c0_48, %c0_49] : memref<16x64xf32, #tpu.memory_space<vmem>>, vector<16x64xf32>
      tpu.vector_store %arg11[%c0_48, %c0_49], %90 {strides = array<i32>} : memref<16x64xf32, #tpu.memory_space<vmem>>, vector<16x64xf32>,
    } else {
    }
    %c0 = arith.constant 0 : index
    %c0_1 = arith.constant 0 : index
    %c0_2 = arith.constant 0 : index
    %3 = vector.load %arg2[%c0, %c0_1, %c0_2] : memref<1x16x32xf32, #tpu.memory_space<vmem>>, vector<1x16x32xf32>
    %4 = vector.shape_cast %3 : vector<1x16x32xf32> to vector<16x32xf32>
    %c0_3 = arith.constant 0 : index
    %c0_4 = arith.constant 0 : index
    %5 = vector.load %arg4[%c0_3, %c0_4] : memref<32x32xf32, #tpu.memory_space<vmem>>, vector<32x32xf32>
    %cst = arith.constant dense<0.000000e+00> : vector<16x32xf32>
    %6 = tpu.matmul %4, %5, %cst {dimension_numbers = #tpu.dot_dimension_numbers<[1], [0], [0], [1], [0, 0, 1, 1], [], []>, precision = #tpu.contract_precision<fp32>} : vector<16x32xf32>, vector<32x32xf32>, vector<16x32xf32> -> vector<16x32xf32>
    %c0_5 = arith.constant 0 : index
    %c0_6 = arith.constant 0 : index
    %7 = vector.load %arg5[%c0_5, %c0_6] : memref<1x32xf32, #tpu.memory_space<vmem>>, vector<1x32xf32>
    %8 = vector.broadcast %7 : vector<1x32xf32> to vector<16x32xf32>
    %9 = arith.addf %6, %8 : vector<16x32xf32>
    %c0_7 = arith.constant 0 : index
    %c0_8 = arith.constant 0 : index
    %10 = vector.load %arg11[%c0_7, %c0_8] : memref<16x64xf32, #tpu.memory_space<vmem>>, vector<16x64xf32>
    %11 = vector.extract_strided_slice %9 {offsets = [0, 0], sizes = [16, 8], strides = [1, 1]} : vector<16x32xf32> to vector<16x8xf32>
    %12 = vector.extract_strided_slice %10 {offsets = [0, 0], sizes = [16, 8], strides = [1, 1]} : vector<16x64xf32> to vector<16x8xf32>
    %13 = vector.extract_strided_slice %10 {offsets = [0, 32], sizes = [16, 8], strides = [1, 1]} : vector<16x64xf32> to vector<16x8xf32>
    %cst_9 = arith.constant dense<0.000000e+00> : vector<16x16xf32>
    %14 = tpu.matmul %11, %12, %cst_9 {dimension_numbers = #tpu.dot_dimension_numbers<[1], [1], [0], [0], [0, 0, 1, 0], [], []>, precision = #tpu.contract_precision<fp32>} : vector<16x8xf32>, vector<16x8xf32>, vector<16x16xf32> -> vector<16x16xf32>
    %cst_10 = arith.constant dense<0xFF800000> : vector<16xf32>
    %15 = vector.multi_reduction <maximumf>, %14, %cst_10 [1] : vector<16x16xf32> to vector<16xf32>
    %16 = vector.shape_cast %15 : vector<16xf32> to vector<16x1xf32>
    %17 = vector.broadcast %16 : vector<16x1xf32> to vector<16x16xf32>
    %18 = arith.subf %14, %17 : vector<16x16xf32>
    %19 = math.exp %18 : vector<16x16xf32>
    %cst_11 = arith.constant dense<0.000000e+00> : vector<16xf32>
    %20 = vector.multi_reduction <add>, %19, %cst_11 [1] : vector<16x16xf32> to vector<16xf32>
    %21 = vector.shape_cast %20 : vector<16xf32> to vector<16x1xf32>
    %cst_12 = arith.constant dense<0.000000e+00> : vector<16x8xf32>
    %22 = tpu.matmul %19, %13, %cst_12 {dimension_numbers = #tpu.dot_dimension_numbers<[1], [0], [0], [1], [0, 0, 1, 1], [], []>, precision = #tpu.contract_precision<fp32>} : vector<16x16xf32>, vector<16x8xf32>, vector<16x8xf32> -> vector<16x8xf32>
    %23 = tpu.reciprocal %21 : vector<16x1xf32> -> vector<16x1xf32>
    %24 = vector.broadcast %23 : vector<16x1xf32> to vector<16x8xf32>
    %25 = arith.mulf %22, %24 : vector<16x8xf32>
    %c0_13 = arith.constant 0 : index
    %c0_14 = arith.constant 0 : index
    %26 = vector.load %arg12[%c0_13, %c0_14] : memref<16x32xf32, #tpu.memory_space<vmem>>, vector<16x8xf32>
    tpu.vector_store %arg12[%c0_13, %c0_14], %25 {strides = array<i32>} : memref<16x32xf32, #tpu.memory_space<vmem>>, vector<16x8xf32>,
    %27 = vector.extract_strided_slice %9 {offsets = [0, 8], sizes = [16, 8], strides = [1, 1]} : vector<16x32xf32> to vector<16x8xf32>
    %28 = vector.extract_strided_slice %10 {offsets = [0, 8], sizes = [16, 8], strides = [1, 1]} : vector<16x64xf32> to vector<16x8xf32>
    %29 = vector.extract_strided_slice %10 {offsets = [0, 40], sizes = [16, 8], strides = [1, 1]} : vector<16x64xf32> to vector<16x8xf32>
    %cst_15 = arith.constant dense<0.000000e+00> : vector<16x16xf32>
    %30 = tpu.matmul %27, %28, %cst_15 {dimension_numbers = #tpu.dot_dimension_numbers<[1], [1], [0], [0], [0, 0, 1, 0], [], []>, precision = #tpu.contract_precision<fp32>} : vector<16x8xf32>, vector<16x8xf32>, vector<16x16xf32> -> vector<16x16xf32>
    %cst_16 = arith.constant dense<0xFF800000> : vector<16xf32>
    %31 = vector.multi_reduction <maximumf>, %30, %cst_16 [1] : vector<16x16xf32> to vector<16xf32>
    %32 = vector.shape_cast %31 : vector<16xf32> to vector<16x1xf32>
    %33 = vector.broadcast %32 : vector<16x1xf32> to vector<16x16xf32>
    %34 = arith.subf %30, %33 : vector<16x16xf32>
    %35 = math.exp %34 : vector<16x16xf32>
    %cst_17 = arith.constant dense<0.000000e+00> : vector<16xf32>
    %36 = vector.multi_reduction <add>, %35, %cst_17 [1] : vector<16x16xf32> to vector<16xf32>
    %37 = vector.shape_cast %36 : vector<16xf32> to vector<16x1xf32>
    %cst_18 = arith.constant dense<0.000000e+00> : vector<16x8xf32>
    %38 = tpu.matmul %35, %29, %cst_18 {dimension_numbers = #tpu.dot_dimension_numbers<[1], [0], [0], [1], [0, 0, 1, 1], [], []>, precision = #tpu.contract_precision<fp32>} : vector<16x16xf32>, vector<16x8xf32>, vector<16x8xf32> -> vector<16x8xf32>
    %39 = tpu.reciprocal %37 : vector<16x1xf32> -> vector<16x1xf32>
    %40 = vector.broadcast %39 : vector<16x1xf32> to vector<16x8xf32>
    %41 = arith.mulf %38, %40 : vector<16x8xf32>
    %c0_19 = arith.constant 0 : index
    %c8 = arith.constant 8 : index
    %42 = vector.load %arg12[%c0_19, %c8] : memref<16x32xf32, #tpu.memory_space<vmem>>, vector<16x8xf32>
    tpu.vector_store %arg12[%c0_19, %c8], %41 {strides = array<i32>} : memref<16x32xf32, #tpu.memory_space<vmem>>, vector<16x8xf32>,
    %43 = vector.extract_strided_slice %9 {offsets = [0, 16], sizes = [16, 8], strides = [1, 1]} : vector<16x32xf32> to vector<16x8xf32>
    %44 = vector.extract_strided_slice %10 {offsets = [0, 16], sizes = [16, 8], strides = [1, 1]} : vector<16x64xf32> to vector<16x8xf32>
    %45 = vector.extract_strided_slice %10 {offsets = [0, 48], sizes = [16, 8], strides = [1, 1]} : vector<16x64xf32> to vector<16x8xf32>
    %cst_20 = arith.constant dense<0.000000e+00> : vector<16x16xf32>
    %46 = tpu.matmul %43, %44, %cst_20 {dimension_numbers = #tpu.dot_dimension_numbers<[1], [1], [0], [0], [0, 0, 1, 0], [], []>, precision = #tpu.contract_precision<fp32>} : vector<16x8xf32>, vector<16x8xf32>, vector<16x16xf32> -> vector<16x16xf32>
    %cst_21 = arith.constant dense<0xFF800000> : vector<16xf32>
    %47 = vector.multi_reduction <maximumf>, %46, %cst_21 [1] : vector<16x16xf32> to vector<16xf32>
    %48 = vector.shape_cast %47 : vector<16xf32> to vector<16x1xf32>
    %49 = vector.broadcast %48 : vector<16x1xf32> to vector<16x16xf32>
    %50 = arith.subf %46, %49 : vector<16x16xf32>
    %51 = math.exp %50 : vector<16x16xf32>
    %cst_22 = arith.constant dense<0.000000e+00> : vector<16xf32>
    %52 = vector.multi_reduction <add>, %51, %cst_22 [1] : vector<16x16xf32> to vector<16xf32>
    %53 = vector.shape_cast %52 : vector<16xf32> to vector<16x1xf32>
    %cst_23 = arith.constant dense<0.000000e+00> : vector<16x8xf32>
    %54 = tpu.matmul %51, %45, %cst_23 {dimension_numbers = #tpu.dot_dimension_numbers<[1], [0], [0], [1], [0, 0, 1, 1], [], []>, precision = #tpu.contract_precision<fp32>} : vector<16x16xf32>, vector<16x8xf32>, vector<16x8xf32> -> vector<16x8xf32>
    %55 = tpu.reciprocal %53 : vector<16x1xf32> -> vector<16x1xf32>
    %56 = vector.broadcast %55 : vector<16x1xf32> to vector<16x8xf32>
    %57 = arith.mulf %54, %56 : vector<16x8xf32>
    %c0_24 = arith.constant 0 : index
    %c16 = arith.constant 16 : index
    %58 = vector.load %arg12[%c0_24, %c16] : memref<16x32xf32, #tpu.memory_space<vmem>>, vector<16x8xf32>
    tpu.vector_store %arg12[%c0_24, %c16], %57 {strides = array<i32>} : memref<16x32xf32, #tpu.memory_space<vmem>>, vector<16x8xf32>,
    %59 = vector.extract_strided_slice %9 {offsets = [0, 24], sizes = [16, 8], strides = [1, 1]} : vector<16x32xf32> to vector<16x8xf32>
    %60 = vector.extract_strided_slice %10 {offsets = [0, 24], sizes = [16, 8], strides = [1, 1]} : vector<16x64xf32> to vector<16x8xf32>
    %61 = vector.extract_strided_slice %10 {offsets = [0, 56], sizes = [16, 8], strides = [1, 1]} : vector<16x64xf32> to vector<16x8xf32>
    %cst_25 = arith.constant dense<0.000000e+00> : vector<16x16xf32>
    %62 = tpu.matmul %59, %60, %cst_25 {dimension_numbers = #tpu.dot_dimension_numbers<[1], [1], [0], [0], [0, 0, 1, 0], [], []>, precision = #tpu.contract_precision<fp32>} : vector<16x8xf32>, vector<16x8xf32>, vector<16x16xf32> -> vector<16x16xf32>
    %cst_26 = arith.constant dense<0xFF800000> : vector<16xf32>
    %63 = vector.multi_reduction <maximumf>, %62, %cst_26 [1] : vector<16x16xf32> to vector<16xf32>
    %64 = vector.shape_cast %63 : vector<16xf32> to vector<16x1xf32>
    %65 = vector.broadcast %64 : vector<16x1xf32> to vector<16x16xf32>
    %66 = arith.subf %62, %65 : vector<16x16xf32>
    %67 = math.exp %66 : vector<16x16xf32>
    %cst_27 = arith.constant dense<0.000000e+00> : vector<16xf32>
    %68 = vector.multi_reduction <add>, %67, %cst_27 [1] : vector<16x16xf32> to vector<16xf32>
    %69 = vector.shape_cast %68 : vector<16xf32> to vector<16x1xf32>
    %cst_28 = arith.constant dense<0.000000e+00> : vector<16x8xf32>
    %70 = tpu.matmul %67, %61, %cst_28 {dimension_numbers = #tpu.dot_dimension_numbers<[1], [0], [0], [1], [0, 0, 1, 1], [], []>, precision = #tpu.contract_precision<fp32>} : vector<16x16xf32>, vector<16x8xf32>, vector<16x8xf32> -> vector<16x8xf32>
    %71 = tpu.reciprocal %69 : vector<16x1xf32> -> vector<16x1xf32>
    %72 = vector.broadcast %71 : vector<16x1xf32> to vector<16x8xf32>
    %73 = arith.mulf %70, %72 : vector<16x8xf32>
    %c0_29 = arith.constant 0 : index
    %c24 = arith.constant 24 : index
    %74 = vector.load %arg12[%c0_29, %c24] : memref<16x32xf32, #tpu.memory_space<vmem>>, vector<16x8xf32>
    tpu.vector_store %arg12[%c0_29, %c24], %73 {strides = array<i32>} : memref<16x32xf32, #tpu.memory_space<vmem>>, vector<16x8xf32>,
    %c0_30 = arith.constant 0 : index
    %c0_31 = arith.constant 0 : index
    %75 = vector.load %arg12[%c0_30, %c0_31] : memref<16x32xf32, #tpu.memory_space<vmem>>, vector<16x32xf32>
    %c0_32 = arith.constant 0 : index
    %c0_33 = arith.constant 0 : index
    %76 = vector.load %arg8[%c0_32, %c0_33] : memref<32x32xf32, #tpu.memory_space<vmem>>, vector<32x32xf32>
    %cst_34 = arith.constant dense<0.000000e+00> : vector<16x32xf32>
    %77 = tpu.matmul %75, %76, %cst_34 {dimension_numbers = #tpu.dot_dimension_numbers<[1], [0], [0], [1], [0, 0, 1, 1], [], []>, precision = #tpu.contract_precision<fp32>} : vector<16x32xf32>, vector<32x32xf32>, vector<16x32xf32> -> vector<16x32xf32>
    %c0_35 = arith.constant 0 : index
    %c0_36 = arith.constant 0 : index
    %78 = vector.load %arg9[%c0_35, %c0_36] : memref<1x32xf32, #tpu.memory_space<vmem>>, vector<1x32xf32>
    %79 = vector.broadcast %78 : vector<1x32xf32> to vector<16x32xf32>
    %80 = arith.addf %77, %79 : vector<16x32xf32>
    %c0_37 = arith.constant 0 : index
    %c0_38 = arith.constant 0 : index
    %c0_39 = arith.constant 0 : index
    %81 = vector.load %arg10[%c0_37, %c0_38, %c0_39] : memref<1x16x32xf32, #tpu.memory_space<vmem>>, vector<1x16x32xf32>
    %82 = vector.shape_cast %81 : vector<1x16x32xf32> to vector<16x32xf32>
    %83 = vector.shape_cast %80 : vector<16x32xf32> to vector<1x16x32xf32>
    tpu.vector_store %arg10[%c0_37, %c0_38, %c0_39], %83 {strides = array<i32>} : memref<1x16x32xf32, #tpu.memory_space<vmem>>, vector<1x16x32xf32>,
    return
  }
  func.func @transform_0(%arg0: i32, %arg1: i32) -> (i32, i32, i32) {
    %c0_i32 = arith.constant 0 : i32
    %c0_i32_0 = arith.constant 0 : i32
    return %arg0, %arg1, %c0_i32 : i32, i32, i32
  }
  func.func @transform_1(%arg0: i32, %arg1: i32) -> (i32, i32, i32) {
    %c0_i32 = arith.constant 0 : i32
    %c0_i32_0 = arith.constant 0 : i32
    %c0_i32_1 = arith.constant 0 : i32
    return %arg0, %c0_i32, %c0_i32_0 : i32, i32, i32
  }
  func.func @transform_2(%arg0: i32, %arg1: i32) -> (i32, i32) {
    %c0_i32 = arith.constant 0 : i32
    %c0_i32_0 = arith.constant 0 : i32
    %c0_i32_1 = arith.constant 0 : i32
    return %c0_i32, %c0_i32_0 : i32, i32
  }
  func.func @transform_3(%arg0: i32, %arg1: i32) -> (i32, i32) {
    %c0_i32 = arith.constant 0 : i32
    %c0_i32_0 = arith.constant 0 : i32
    %c0_i32_1 = arith.constant 0 : i32
    return %c0_i32, %c0_i32_0 : i32, i32
  }
  func.func @transform_4(%arg0: i32, %arg1: i32) -> (i32, i32) {
    %c0_i32 = arith.constant 0 : i32
    %c0_i32_0 = arith.constant 0 : i32
    %c0_i32_1 = arith.constant 0 : i32
    return %c0_i32, %c0_i32_0 : i32, i32
  }
  func.func @transform_5(%arg0: i32, %arg1: i32) -> (i32, i32) {
    %c0_i32 = arith.constant 0 : i32
    %c0_i32_0 = arith.constant 0 : i32
    %c0_i32_1 = arith.constant 0 : i32
    return %c0_i32, %c0_i32_0 : i32, i32
  }
  func.func @transform_6(%arg0: i32, %arg1: i32) -> (i32, i32) {
    %c0_i32 = arith.constant 0 : i32
    %c0_i32_0 = arith.constant 0 : i32
    %c0_i32_1 = arith.constant 0 : i32
    return %c0_i32, %c0_i32_0 : i32, i32
  }
  func.func @transform_7(%arg0: i32, %arg1: i32) -> (i32, i32) {
    %c0_i32 = arith.constant 0 : i32
    %c0_i32_0 = arith.constant 0 : i32
    %c0_i32_1 = arith.constant 0 : i32
    return %c0_i32, %c0_i32_0 : i32, i32
  }
  func.func @transform_8(%arg0: i32, %arg1: i32) -> (i32, i32, i32) {
    %c0_i32 = arith.constant 0 : i32
    %c0_i32_0 = arith.constant 0 : i32
    return %arg0, %arg1, %c0_i32 : i32, i32, i32
  }
}

</mosaic_0001>

<bundles_post_ra>
// kernel: tpu_custom_call.1
= control target key start
LH: loop header
LB: loop body
LE: loop exit
PB: predicated region body
PF: predicated region fallthrough
CT: control target
= control target key end

     0   :  { %s4238_s0 = inlined_call_operand.hbm [shape: f32[2,16,32], index: 0, kind: input, shape index: {}]   ;;  %s4239_s1 = inlined_call_operand.hbm [shape: f32[2,16,32], index: 1, kind: input, shape index: {}]   ;;  %s4240_s2 = inlined_call_operand.hbm [shape: f32[32,32], index: 2, kind: input, shape index: {}]   ;;  %s4241_s3 = inlined_call_operand.vmem [shape: f32[1,32], index: 3, kind: input, shape index: {}]   ;;  %s4242_s4 = inlined_call_operand.hbm [shape: f32[32,64], index: 4, kind: input, shape index: {}]   ;;  %s4243_s5 = inlined_call_operand.vmem [shape: f32[1,64], index: 5, kind: input, shape index: {}]   ;;  %s4244_s6 = inlined_call_operand.hbm [shape: f32[32,32], index: 6, kind: input, shape index: {}]   ;;  %s4245_s7 = inlined_call_operand.vmem [shape: f32[1,32], index: 7, kind: input, shape index: {}]   ;;  %s4246_s8 = inlined_call_operand.hbm [shape: f32[2,16,32], index: 8, kind: output, shape index: {}]  }
   0x1   :  { %4255 = sst [smem:[#allocation24_spill]] %s4240_s2 }
   0x2   :  { %4256 = sst [smem:[#allocation25_spill]] %s4242_s4 }
   0x3   :  { %4257 = sst [smem:[#allocation26_spill]] %s4244_s6 }
   0x4   :  { %13 = vsyncpa [#allocation5], 0 }
   0x5   :  { %15 = vsyncpa [#allocation5 + $0x1], 0 }
   0x6   :  { %16 = vsyncpa [#allocation8], 0 }
   0x7   :  { %18 = vsyncpa [#allocation8 + $0x1], 0 }
   0x8   :  { %19 = vsyncpa [#allocation11], 0 }
   0x9   :  { %20 = vsyncpa [#allocation6], 0 }
   0xa   :  { %22 = vsyncpa [#allocation6 + $0x1], 0  ;;  %s3648_s27 = smov 0   ;;  %s3650_s28 = smov 0  }
   0xb   :  { %s3652_s29 = smov 0   ;;  %s3654_s30 = smov 0  }
   0xc   :  { %s3656_s9 = smov 0   ;;  %s3658_s10 = smov 0  }
   0xd LB: > { %4258 = sst [smem:[#allocation19_spill]] %s3565_s27  ;;  %s3679_s11 = sadd.s32 4294967295, %s3585_s10   ;;  %s3585_s10 = sphi %s3658_s10, %s28_s10   ;;  %s3581_s9 = sphi %s3656_s9, %s4278_s9   ;;  %s3577_s30 = sphi %s3654_s30, %s4277_s30   ;;  %s3573_s29 = sphi %s3652_s29, %s4281_s29   ;;  %s3569_s28 = sphi %s3650_s28, %s4280_s28   ;;  %s3565_s27 = sphi %s3648_s27, %s4279_s27  }
   0xe   : > { %4259 = sst [smem:[#allocation20_spill]] %s3581_s9  ;;  %s3160_s12 = sadd.s32 4294967294, %s3585_s10  }
   0xf   : > { %p62_p0 = scmp.ne.s32.totalorder %s3569_s28, %s3565_s27  ;;  %p63_p1 = scmp.eq.s32.totalorder %s3679_s11, 0 }
  0x10   : > { %p240_p2 = scmp.eq.s32.totalorder %s3679_s11, 1  ;;  %p246_p3 = scmp.eq.s32.totalorder %s3160_s12, 1 }
  0x11   : > { %p3688_p4 = por %p63_p1, %p62_p0  ;;  %p3161_p5 = scmp.ge.s32.totalorder %s3585_s10, 1 }
  0x12   : > { %p3693_p6 = por %p246_p3, %p62_p0  ;;  %p253_p7 = scmp.lt.s32.totalorder %s3585_s10, 3 }
  0x13   : > { %s4263_s2 = sld [smem:[#allocation24_spill]]  ;;  %s3587_s19 = smov [#allocation9]  }
  0x14   : > { %s4261_s14 = scalar_select %p3693_p6, 1, 0 }
  0x15   : > { %p3701_p8 = pnand %p3161_p5, %p253_p7  ;;  %s266_s20 = sshll.u32 %s3587_s19, 4  ;;  %s267_s20 = int_to_ptr.vmem [resolvable:$true] %s266_s20 }
  0x16   : > { %4262 = sst [smem:[#allocation21_spill]] %s4261_s14  ;;  %p3165_p11 = scmp.ge.s32.totalorder %s3585_s10, 2 }
  0x17   : > { %p3213_p9 = pneg %p3701_p8  ;;  %s4266_s4 = sld [smem:[#allocation25_spill]] }
  0x18   : > { %s4247_s25 = smov 128   ;;  %s4249_s26 = smov 8  }
  0x19   : > { %s264_s17 = sshll.u32 %s4263_s2, 4  ;;  %p3709_p10 = pnand %p3213_p9, %p63_p1  ;;  %s265_s17 = int_to_ptr.hbm [resolvable:$true] %s264_s17 }
  0x1a   : > { %s3590_s12 = smov [#allocation10]   ;;  %s4267_s6 = sld [smem:[#allocation26_spill]] }
  0x1b   : > { %3216 = dma.hbm_to_vmem [thread:$0]  (!%p3709_p10), %s265_s17, 512, %s267_s20, [#allocation8], %s4247_s25, %s4247_s25, %s4249_s26  }
  0x1c   : > { %s283_s15 = sshll.u32 %s3590_s12, 4  ;;  %s3591_s23 = smov [#allocation12]   ;;  %s284_s15 = int_to_ptr.vmem [resolvable:$true] %s283_s15 }
  0x1d   : > { %s281_s24 = sshll.u32 %s4266_s4, 4  ;;  %s300_s2 = sshll.u32 %s3591_s23, 4  ;;  %s282_s24 = int_to_ptr.hbm [resolvable:$true] %s281_s24  ;;  %s301_s2 = int_to_ptr.vmem [resolvable:$true] %s300_s2 }
  0x1e   : > { %3219 = dma.hbm_to_vmem [thread:$0]  (!%p3709_p10), %s282_s24, 512, %s284_s15, [#allocation11], %s4247_s25, %s4247_s25, %s4249_s26  }
  0x1f   : > { %s40_s17 = sadd.s32 1, %s3581_s9  ;;  %s49_s20 = sadd.s32 1, %s3573_s29 }
  0x20   : > { %s298_s22 = sshll.u32 %s4267_s6, 4  ;;  %p42_p12 = scmp.ge.s32.totalorder %s40_s17, 2  ;;  %s299_s22 = int_to_ptr.hbm [resolvable:$true] %s298_s22 }
  0x21   : > { %3222 = dma.hbm_to_vmem [thread:$0]  (!%p3709_p10), %s299_s22, 512, %s301_s2, [#allocation11], %s4247_s25, %s4247_s25, %s4249_s26  }
  0x22   : > { %p56_p13 = scmp.ne.s32.totalorder %s3573_s29, %s3569_s28  ;;  %p57_p0 = scmp.eq.s32.totalorder %s3585_s10, 0 }
  0x23   : > { %s4283_s17 = smov (%p42_p12, %s40_s17), 0  ;;  %p3237_p7 = scmp.lt.s32.totalorder %s3585_s10, 2 }
  0x24   : > { %4268 = sst [smem:[#allocation22_spill]] %s4283_s17  ;;  %p3742_p3 = por %p57_p0, %p56_p13 }
  0x25   : > { %p3748_p5 = por %p240_p2, %p56_p13  ;;  %s44_s12 = ssub.s32 %s3581_s9, %s4283_s17 }
  0x26   : > { %p47_p9 = scmp.eq.s32.totalorder %s44_s12, 0  ;;  %s317_s2 = sand.u32 1, %s3573_s29  }
  0x27   : > { %s3166_s15 = sshll.u32 %s317_s2, 4  ;;  %s3184_s19 = sshll.u32 %s3581_s9, 4 }
  0x28   : > { %s3757_s16 = scalar_select %p47_p9, %s3573_s29, %s49_s20  }
  0x29   : > { %s328_s25 = scalar_lea.hbm %s4238_s0, %s3184_s19  ;;  %s321_s26 = scalar_lea.vmem [#allocation4], %s3166_s15 }
  0x2a   : > { %4271 = sst [smem:[#allocation23_spill]] %s3757_s16  ;;  %s331_s4 = sshll.u32 %s321_s26, 4  ;;  %s332_s4 = int_to_ptr.vmem [resolvable:$true] %s331_s4 }
  0x2b   : > { %s329_s6 = sshll.u32 %s328_s25, 4  ;;  %p3224_p2 = pnand %p3237_p7, %p3742_p3  ;;  %s330_s6 = int_to_ptr.hbm [resolvable:$true] %s329_s6 }
  0x2c   : > { %s350_s12 = scalar_lea.hbm %s4239_s1, %s3184_s19  ;;  %s318_s20 = scalar_lea.sflag [#allocation5], %s317_s2 }
  0x2d   : > { %s351_s27 = sshll.u32 %s350_s12, 4  ;;  %s4272_s16 = smov 8   ;;  %s352_s27 = int_to_ptr.hbm [resolvable:$true] %s351_s27 }
  0x2e   : > { %s4273_s9 = smov 128   ;;  %s345_s22 = scalar_lea.vmem [#allocation7], %s3166_s15 }
  0x2f   : > { %3226 = dma.hbm_to_vmem [thread:$0]  (!%p3224_p2), %s330_s6, 256, %s332_s4, %s318_s20, %s4273_s9, %s4273_s9, %s4272_s16  }
  0x30   : > { %s353_s23 = sshll.u32 %s345_s22, 4  ;;  %s341_s26 = sand.u32 1, %s3585_s10   ;;  %s354_s23 = int_to_ptr.vmem [resolvable:$true] %s353_s23 }
  0x31   : > { %s342_s25 = scalar_lea.sflag [#allocation8], %s341_s26  ;;  %365 = sbr.rel (%p3701_p8) target bundleno = 1931 (0x78b), region = 52 }
  0x32   : > { %3229 = dma.hbm_to_vmem [thread:$0]  (!%p3224_p2), %s352_s27, 256, %s354_s23, %s342_s25, %s4273_s9, %s4273_s9, %s4272_s16  }
  0x33   : > { %s3778_s14 = sand.u32 (!%p3701_p8), 1, %s3569_s28  }
  0x34   : > { %s3781_s4 = sshll.u32 (!%p3701_p8), %s3778_s14, 4  ;;  %s368_s6 = scalar_lea.sflag (!%p3701_p8), [#allocation5], %s3778_s14 }
  0x35   : > { %s371_s17 = scalar_lea.vmem (!%p3701_p8), [#allocation4], %s3781_s4 }
  0x36   : > { %3544 = dma.done.wait (%p3688_p4), %s368_s6, 256  }
  0x37   : > { %3546 = vsyncadd (%p3688_p4), %s368_s6, 4294967040  ;;  %s377_s27 = sand.u32 1, %s3679_s11   ;;  %s381_s18 = scalar_lea.vmem [#allocation7], %s3781_s4 }
  0x38   : > { %s378_s9 = scalar_lea.sflag [#allocation8], %s377_s27 }
  0x39   : > { %3548 = dma.done.wait (%p3688_p4), %s378_s9, 256  }
  0x3a   : > { %3550 = vsyncadd (%p3688_p4), %s378_s9, 4294967040 }
  0x3b   : > { %3552 = dma.done.wait (%p63_p1), [#allocation8], 512  }
  0x3c   : > { %3554 = vsyncadd (%p63_p1), [#allocation8], 4294966784 }
  0x3d   : > { %3556 = dma.done.wait (%p63_p1), [#allocation11], 1024  }
  0x3e   : > { %3558 = vsyncadd (%p63_p1), [#allocation11], 4294966272  ;;  %vm451_vm0 = vcmask 261120   ;;  %v446_v0 = vld [vmem:[#allocation10 + $0x18] sm:$0xff]  ;;  %v445_v1 = vld [vmem:[#allocation10 + $0x10] sm:$0xff]  ;;  %vm674_vm1 = vcmask 523264  }
  0x3f   : > { %v444_v2 = vld [vmem:[#allocation10 + $0x8] sm:$0xff]  ;;  %v3803_v3 = vand.u32 4294901760, %v446_v0  ;;  %v3805_v4 = vand.u32 4294901760, %v445_v1  ;;  %v443_v6 = vld [vmem:[#allocation10] sm:$0xff]  ;;  %v682_v16 = vld [vmem:[#allocation9 + $0x18] sm:$0xff]  ;;  %vm912_vm2 = vcmask 64512  }
  0x40   : > { %v3807_v5 = vand.u32 4294901760, %v444_v2  ;;  %v442_v7 = vld [vmem:[%s381_s18 + $0x8] sm:$0xff]  ;;  %v441_v8 = vld [vmem:[%s381_s18] sm:$0xff]  ;;  %v3809_v9 = vand.u32 4294901760, %v443_v6  ;;  %v3837_v26 = vand.u32 4294901760, %v682_v16  ;;  %s3592_s15 = smov 120  }
  0x41   : > { %v456_v10 = vsel %vm451_vm0, %v442_v7, 0  ;;  %v453_v11 = vsel %vm451_vm0, %v441_v8, 0  ;;  %3187 = vmatpush.msra.mxu2 %v3803_v3  ;;  %v508_v12 = vsub.f32 %v446_v0, %v3803_v3  ;;  %v514_v14 = vsub.f32 %v445_v1, %v3805_v4  ;;  %471 = vmatpush.msra.mxu0 %v3803_v3  ;;  %v681_v23 = vld [vmem:[#allocation9 + $0x10] sm:$0xff]  ;;  %v680_v33 = vld [vmem:[#allocation9 + $0x8] sm:$0xff]  ;;  %v679_v39 = vld [vmem:[#allocation9] sm:$0xff]  ;;  %s3593_s16 = smov 96  }
  0x42   : > { %v3815_v13 = vand.u32 4294901760, %v456_v10  ;;  %v3819_v15 = vsub.f32 %v444_v2, %v3807_v5  ;;  %v3823_v17 = vsub.f32 %v443_v6, %v3809_v9  ;;  %v3825_v18 = vand.u32 4294901760, %v453_v11  ;;  %v677_v44 = vld [vmem:[%s371_s17] sm:$0xff]  ;;  %v678_v57 = vld [vmem:[%s371_s17 + $0x8] sm:$0xff]  ;;  %s3594_s19 = smov 88   ;;  %s3595_s12 = smov 112  }
  0x43   : > { %3188 = vmatpush.msra.mxu2 %v3805_v4  ;;  %v509_v19 = vand.u32 4294901760, %v508_v12  ;;  %v515_v21 = vand.u32 4294901760, %v514_v14  ;;  %473 = vmatpush.msra.mxu0 %v3805_v4  ;;  %v3846_v32 = vand.u32 4294901760, %v681_v23  ;;  %v3860_v42 = vsub.f32 %v682_v16, %v3837_v26  ;;  %s3596_s20 = smov 80   ;;  %s3597_s22 = smov 104  }
  0x44   : > { %v3829_v20 = vsub.f32 %v456_v10, %v3815_v13  ;;  %v521_v22 = vand.u32 4294901760, %v3819_v15  ;;  %v527_v24 = vand.u32 4294901760, %v3823_v17  ;;  %v3835_v25 = vsub.f32 %v453_v11, %v3825_v18  ;;  %s3598_s23 = smov 72   ;;  %s3599_s26 = smov 8  }
  0x45   : > { %3189 = vmatpush.msra.mxu2 %v3807_v5  ;;  %v510_v27 = vsub.f32 %v508_v12, %v509_v19  ;;  %v516_v29 = vsub.f32 %v514_v14, %v515_v21  ;;  %475 = vmatpush.msra.mxu0 %v3807_v5  ;;  %v3862_v43 = vand.u32 4294901760, %v680_v33  ;;  %v750_v47 = vsub.f32 %v681_v23, %v3846_v32  ;;  %s3600_s25 = smov 16   ;;  %s3601_s6 = smov 24  }
  0x46   : > { %v488_v28 = vand.u32 4294901760, %v3829_v20  ;;  %v522_v30 = vsub.f32 %v3819_v15, %v521_v22  ;;  %v480_v31 = vand.u32 4294901760, %v3835_v25  ;;  %v528_v37 = vsub.f32 %v3823_v17, %v527_v24  ;;  %s3186_s9 = sshll.u32 %s3577_s30, 4  ;;  %s434_s18 = scalar_lea.vmem [#allocation13], %s3781_s4 }
  0x47   : > { %3190 = vmatpush.msra.mxu2 %v3809_v9  ;;  %v511_v34 = vand.u32 4294901760, %v510_v27  ;;  %v517_v36 = vand.u32 4294901760, %v516_v29  ;;  %477 = vmatpush.msra.mxu0 %v3809_v9  ;;  %v3867_v48 = vand.u32 4294901760, %v679_v39  ;;  %v689_v49 = vsel %vm451_vm0, %v677_v44, 0  ;;  %s3017_s24 = scalar_lea.hbm %s4246_s8, %s3186_s9  ;;  %s3018_s2 = sshll.u32 %s434_s18, 4  ;;  %s3019_s2 = int_to_ptr.vmem [resolvable:$true] %s3018_s2 }
  0x48   : > { %v489_v35 = vsub.f32 %v3829_v20, %v488_v28  ;;  %v481_v38 = vsub.f32 %v3835_v25, %v480_v31  ;;  %v523_v41 = vand.u32 4294901760, %v522_v30  ;;  %v529_v46 = vand.u32 4294901760, %v528_v37  ;;  %v3307_v37 = vld [vmem:[%s4241_s3] ss:$0 sm:$0xff]  ;;  %s3004_s30 = scalar_lea.sflag [#allocation6], %s3778_s14 }
  0x49   : > { %554 = vmatpush.msrb.mxu2 %v508_v12  ;;  %623 = vmatpush.msrb.mxu0 %v509_v19  ;;  %v745_v50 = vand.u32 4294901760, %v3860_v42  ;;  %v756_v51 = vsub.f32 %v680_v33, %v3862_v43  ;;  %v751_v52 = vand.u32 4294901760, %v750_v47  ;;  %v3875_v53 = vand.u32 4294901760, %v689_v49 }
  0x4a   : > { %3191 = vmatpush.msra.mxu3 %v511_v34  ;;  %v490_v40 = vand.u32 4294901760, %v489_v35  ;;  %512 = vmatpush.msra.mxu1 %v511_v34  ;;  %v482_v45 = vand.u32 4294901760, %v481_v38  ;;  %v762_v54 = vsub.f32 %v679_v39, %v3867_v48  ;;  %v692_v61 = vsel %vm451_vm0, %v678_v57, 0 }
  0x4b   : > { %557 = vmatpush.msrb.mxu2 %v514_v14  ;;  %627 = vmatpush.msrb.mxu0 %v515_v21  ;;  %v746_v55 = vsub.f32 %v3860_v42, %v745_v50  ;;  %v757_v56 = vand.u32 4294901760, %v756_v51  ;;  %v752_v58 = vsub.f32 %v750_v47, %v751_v52  ;;  %v715_v59 = vsub.f32 %v689_v49, %v3875_v53 }
  0x4c   : > { %491 = vmatmul.f32.vlgmr.msra.gmra.mxu2 %v490_v40  ;;  %3192 = vmatpush.msra.mxu3 %v517_v36  ;;  %v763_v60 = vand.u32 4294901760, %v762_v54  ;;  %vm1115_vm3 = vcmask 130048  }
  0x4d   : > { %560 = vmatpush.msrb.mxu2 %v3819_v15  ;;  %518 = vmatpush.msra.mxu1 %v517_v36  ;;  %v747_v62 = vand.u32 4294901760, %v746_v55  ;;  %v758_v63 = vsub.f32 %v756_v51, %v757_v56  ;;  %v753_v0 = vand.u32 4294901760, %v752_v58  ;;  %v716_v1 = vand.u32 4294901760, %v715_v59 }
  0x4e   : > { %3193 = vmatpush.msra.mxu3 %v523_v41  ;;  %483 = vmatmul.f32.vlgmr.msra.gmra.mxu0 %v482_v45  ;;  %v764_v2 = vsub.f32 %v762_v54, %v763_v60 }
  0x4f   : > { %563 = vmatpush.msrb.mxu2 %v3823_v17  ;;  %524 = vmatpush.msra.mxu1 %v523_v41 }
  0x50   : > { %3194 = vmatpush.msra.mxu3 %v529_v46  ;;  %631 = vmatpush.msrb.mxu0 %v521_v22  ;;  %v765_v6 = vand.u32 4294901760, %v764_v2 }
  0x51   : > { %707 = vmatpush.msra.mxu2 %v3837_v26  ;;  %536 = vmatmul.f32.vlgmr.msra.gmra.mxu3 %v3815_v13 }
  0x52   : > { %530 = vmatpush.msra.mxu1 %v529_v46  ;;  %588 = vmatpush.msrb.mxu3 %v3803_v3 }
  0x53   : > { %532 = vmatmul.f32.vlgmr.msra.gmra.mxu1 %v3825_v18  ;;  %709 = vmatpush.msra.mxu2 %v3846_v32 }
  0x54   : > { %658 = vmatpush.msrb.mxu1 %v3803_v3  ;;  %566 = vmatmul.f32.vlgmr.msrb.gmra.mxu2 %v3835_v25  ;;  %v722_v3 = vand.u32 4294901760, %v692_v61 }
  0x55   : > { %590 = vmatpush.msrb.mxu3 %v3805_v4  ;;  %711 = vmatpush.msra.mxu2 %v3862_v43 }
  0x56   : > { %660 = vmatpush.msrb.mxu1 %v3805_v4  ;;  %635 = vmatpush.msrb.mxu0 %v527_v24  ;;  %v759_v4 = vand.u32 4294901760, %v758_v63  ;;  %v723_v7 = vsub.f32 %v692_v61, %v722_v3 }
  0x57   : > { %592 = vmatpush.msrb.mxu3 %v3807_v5  ;;  %637 = vmatmul.f32.vlgmr.msrb.gmra.mxu0 %v3825_v18 }
  0x58   : > { %662 = vmatpush.msrb.mxu1 %v3807_v5  ;;  %713 = vmatpush.msra.mxu2 %v3867_v48  ;;  %v717_v5 = vsub.f32 %v715_v59, %v716_v1 }
  0x59   : > { %594 = vmatpush.msrb.mxu3 %v3809_v9  ;;  %790 = vmatpush.msra.mxu0 %v3860_v42 }
  0x5a   : > { %598 = vmatmul.f32.vlgmr.msrb.gmra.mxu3 %v480_v31  ;;  %664 = vmatpush.msrb.mxu1 %v3809_v9  ;;  %v718_v8 = vand.u32 4294901760, %v717_v5  ;;  %v724_v9 = vand.u32 4294901760, %v723_v7 }
  0x5b   : > { %748 = vmatpush.msra.mxu3 %v747_v62  ;;  %666 = vmatmul.f32.vlgmr.msrb.gmra.mxu1 %v3825_v18 }
  0x5c   : > { %859 = vmatpush.msrb.mxu2 %v745_v50  ;;  %824 = vmatpush.msra.mxu1 %v3837_v26  ;;  %v725_v10 = vsub.f32 %v723_v7, %v724_v9 }
  0x5d   : > { %571 = vmatmul.f32.gmra.mxu2 %v3829_v20  ;;  %754 = vmatpush.msra.mxu3 %v753_v0 }
  0x5e   : > { %863 = vmatpush.msrb.mxu2 %v751_v52  ;;  %793 = vmatpush.msra.mxu0 %v750_v47  ;;  %v726_v11 = vand.u32 4294901760, %v725_v10 }
  0x5f   : > { %760 = vmatpush.msra.mxu3 %v759_v4  ;;  %826 = vmatpush.msra.mxu1 %v3846_v32 }
  0x60   : > { %641 = vmatmul.f32.gmra.mxu0 %v3815_v13  ;;  %867 = vmatpush.msrb.mxu2 %v757_v56 }
  0x61   : > { %766 = vmatpush.msra.mxu3 %v765_v6  ;;  %796 = vmatpush.msra.mxu0 %v756_v51 }
  0x62   : > { %604 = vmatmul.f32.gmra.mxu3 %v488_v28  ;;  %828 = vmatpush.msra.mxu1 %v3862_v43 }
  0x63   : > { %894 = vmatpush.msrb.mxu3 %v3837_v26  ;;  %670 = vmatmul.f32.gmra.mxu1 %v3815_v13  ;;  %v3306_v13 = vld [vmem:[%s4243_s5] ss:$0 sm:$0xff] }
  0x64   : > { %799 = vmatpush.msra.mxu0 %v762_v54  ;;  %871 = vmatpush.msrb.mxu2 %v763_v60 }
  0x65   : > { %719 = vmatmul.f32.vlgmr.msra.gmra.mxu2 %v718_v8  ;;  %896 = vmatpush.msrb.mxu3 %v3846_v32 }
  0x66   : > { %830 = vmatpush.msra.mxu1 %v3867_v48 }
  0x67   : > { %898 = vmatpush.msrb.mxu3 %v3862_v43 }
  0x68   : > { %802 = vmatmul.f32.vlgmr.msra.gmra.mxu0 %v715_v59 }
  0x69   : > { %900 = vmatpush.msrb.mxu3 %v3867_v48 }
  0x6a   : > { %768 = vmatmul.f32.vlgmr.msra.gmra.mxu3 %v3875_v53 }
  0x6b   : > { %834 = vmatmul.f32.vlgmr.msra.gmra.mxu1 %v716_v1 }
  0x6d   : > { %727 = vmatmul.f32.gmra.mxu2 %v726_v11 }
  0x70   : > { %807 = vmatmul.f32.gmra.mxu0 %v723_v7 }
  0x72   : > { %772 = vmatmul.f32.gmra.mxu3 %v722_v3 }
  0x73   : > { %840 = vmatmul.f32.gmra.mxu1 %v724_v9 }
  0x75   : > { %873 = vmatmul.f32.vlgmr.msrb.gmra.mxu2 %v3875_v53 }
  0x7a   : > { %902 = vmatmul.f32.vlgmr.msrb.gmra.mxu3 %v3875_v53 }
  0x7d   : > { %877 = vmatmul.f32.gmra.mxu2 %v722_v3 }
  0x82   : > { %906 = vmatmul.f32.gmra.mxu3 %v722_v3 }
  0xcb   : > { %v484_v12 = vpop.f32.mrf.mxu0 }
  0xcc   : > { %v485_v15 = vadd.f32 %v3306_v13, %v484_v12 }
  0xcf   : > { %v492_v14 = vpop.f32.mrf.mxu2 }
  0xd0   : > { %v533_v16 = vpop.f32.mrf.mxu1  ;;  %v493_v24 = vadd.f32 %v3306_v13, %v492_v14 }
  0xd1   : > { %v534_v18 = vadd.f32 %v533_v16, %v485_v15 }
  0xd4   : > { %v537_v17 = vpop.f32.mrf.mxu3  ;;  %v638_v21 = vpop.f32.mrf.mxu0 }
  0xd5   : > { %v538_v28 = vadd.f32 %v537_v17, %v493_v24 }
  0xd7   : > { %v567_v19 = vpop.f32.mrf.mxu2 }
  0xd8   : > { %v568_v20 = vadd.f32 %v567_v19, %v534_v18  ;;  %v667_v23 = vpop.f32.mrf.mxu1 }
  0xdd   : > { %v599_v22 = vpop.f32.mrf.mxu3  ;;  %v642_v32 = vpop.f32.mrf.mxu0 }
  0xde   : > { %v600_v25 = vadd.f32 %v599_v22, %v568_v20 }
  0xe0   : > { %v572_v26 = vpop.f32.mrf.mxu2  ;;  %v639_v27 = vadd.f32 %v638_v21, %v600_v25  ;;  %v671_v34 = vpop.f32.mrf.mxu1 }
  0xe1   : > { %v573_v30 = vadd.f32 %v572_v26, %v538_v28 }
  0xe2   : > { %v668_v29 = vadd.f32 %v667_v23, %v639_v27 }
  0xe4   : > { %675 = vst.msk [vmem:[#allocation2] sm:$0xff] %vm674_vm1, %v668_v29 }
  0xe5   : > { %v605_v31 = vpop.f32.mrf.mxu3  ;;  %v803_v44 = vpop.f32.mrf.mxu0 }
  0xe6   : > { %v606_v33 = vadd.f32 %v605_v31, %v573_v30 }
  0xe8   : > { %v643_v35 = vadd.f32 %v642_v32, %v606_v33  ;;  %v720_v36 = vpop.f32.mrf.mxu2  ;;  %v835_v49 = vpop.f32.mrf.mxu1 }
  0xe9   : > { %v721_v41 = vadd.f32 %v3307_v37, %v720_v36 }
  0xea   : > { %v672_v38 = vadd.f32 %v671_v34, %v643_v35 }
  0xeb   : > { %v3928_v39 = vld [vmem:[#allocation2] sm:$0xff] }
  0xec   : > { %676 = vst.msk [vmem:[#allocation2 + $0x8] sm:$0xff] %vm674_vm1, %v672_v38  ;;  %v920_v42 = vsel %vm912_vm2, %v3928_v39, 0 }
  0xed   : > { %v769_v40 = vpop.f32.mrf.mxu3  ;;  %v941_v45 = vand.u32 4294901760, %v920_v42  ;;  %v808_v61 = vpop.f32.mrf.mxu0 }
  0xee   : > { %v770_v46 = vadd.f32 %v769_v40, %v721_v41 }
  0xef   : > { %v981_v52 = vsub.f32 %v920_v42, %v941_v45 }
  0xf0   : > { %v728_v43 = vpop.f32.mrf.mxu2  ;;  %v804_v54 = vadd.f32 %v803_v44, %v770_v46  ;;  %v841_v5 = vpop.f32.mrf.mxu1 }
  0xf1   : > { %v729_v53 = vadd.f32 %v3307_v37, %v728_v43  ;;  %v982_v58 = vand.u32 4294901760, %v981_v52 }
  0xf2   : > { %v836_v59 = vadd.f32 %v835_v49, %v804_v54 }
  0xf3   : > { %v3932_v47 = vld [vmem:[#allocation2 + $0x8] sm:$0xff]  ;;  %v983_v2 = vsub.f32 %v981_v52, %v982_v58 }
  0xf4   : > { %1374 = vrot.lane.b32.xlu2 %v3932_v47, %s3592_s15  ;;  %1136 = vrot.lane.b32.xlu1 %v3932_v47, %s3593_s16  ;;  %v923_v48 = vsel %vm912_vm2, %v3932_v47, 0 }
  0xf5   : > { %v773_v50 = vpop.f32.mrf.mxu3  ;;  %v939_v51 = vand.u32 4294901760, %v923_v48  ;;  %v984_v8 = vand.u32 4294901760, %v983_v2 }
  0xf6   : > { %v774_v60 = vadd.f32 %v773_v50, %v729_v53 }
  0xf7   : > { %940 = vmatpush.xpose.msrb.mxu0 %v939_v51  ;;  %1041 = vmatpush.xpose.msra.mxu3 %v939_v51  ;;  %v975_v55 = vsub.f32 %v923_v48, %v939_v51 }
  0xf8   : > { %v874_v56 = vpop.f32.mrf.mxu2  ;;  %v809_v3 = vadd.f32 %v808_v61, %v774_v60 }
  0xf9   : > { %1011 = vmatpush.xpose.msra.mxu2 %v975_v55  ;;  %v976_v57 = vand.u32 4294901760, %v975_v55  ;;  %v875_v63 = vadd.f32 %v874_v56, %v836_v59 }
  0xfa   : > { %v842_v10 = vadd.f32 %v841_v5, %v809_v3 }
  0xfb   : > { %942 = vmatpush.xpose.msrb.mxu0 %v941_v45  ;;  %1043 = vmatpush.xpose.msra.mxu3 %v941_v45  ;;  %v977_v62 = vsub.f32 %v975_v55, %v976_v57 }
  0xfc   : > { %1372 = vrot.lane.b32.xlu2 %v3928_v39, %s3592_s15  ;;  %1134 = vrot.lane.b32.xlu1 %v3928_v39, %s3593_s16 }
  0xfd   : > { %v903_v0 = vpop.f32.mrf.mxu3  ;;  %1014 = vmatpush.xpose.msra.mxu2 %v981_v52  ;;  %v978_v1 = vand.u32 4294901760, %v977_v62 }
  0xfe   : > { %v3942_v4 = vadd.f32 %v903_v0, %v875_v63 }
  0xff   : > { %1074 = vmatpush.xpose.msra.mxu0 %v976_v57  ;;  %979 = vmatpush.xpose.msrb.mxu1 %v978_v1 }
 0x100   : > { %v914_v6 = vsel %vm912_vm2, %v3942_v4, 0  ;;  %v878_v7 = vpop.f32.mrf.mxu2 }
 0x101   : > { %v943_v9 = vand.u32 4294901760, %v914_v6  ;;  %v879_v12 = vadd.f32 %v878_v7, %v842_v10 }
 0x103   : > { %1078 = vmatpush.xpose.msra.mxu0 %v982_v58  ;;  %985 = vmatpush.xpose.msrb.mxu1 %v984_v8  ;;  %v944_v11 = vsub.f32 %v914_v6, %v943_v9 }
 0x105   : > { %v907_v13 = vpop.f32.mrf.mxu3  ;;  %1017 = vmatmul.f32.vlgmr.msra.gmra.mxu2 %v944_v11  ;;  %v945_v14 = vand.u32 4294901760, %v944_v11 }
 0x106   : > { %v3946_v15 = vadd.f32 %v907_v13, %v879_v12  ;;  %987 = vmatmul.f32.vlgmr.msrb.gmra.mxu1 %v943_v9 }
 0x107   : > { %1103 = vmatpush.xpose.msra.mxu1 %v939_v51  ;;  %1047 = vmatmul.f32.vlgmr.msra.gmra.mxu3 %v945_v14  ;;  %v946_v16 = vsub.f32 %v944_v11, %v945_v14 }
 0x108   : > { %1370 = vrot.lane.b32.xlu1 %v3946_v15, %s3592_s15  ;;  %v917_v17 = vsel %vm912_vm2, %v3946_v15, 0 }
 0x109   : > { %v947_v18 = vand.u32 4294901760, %v946_v16  ;;  %v951_v19 = vand.u32 4294901760, %v917_v17 }
 0x10b   : > { %1105 = vmatpush.xpose.msra.mxu1 %v941_v45  ;;  %948 = vmatmul.f32.vlgmr.msrb.gmra.mxu0 %v947_v18  ;;  %v952_v20 = vsub.f32 %v917_v17, %v951_v19 }
 0x10d   : > { %1022 = vmatmul.f32.gmra.mxu2 %v952_v20  ;;  %v953_v21 = vand.u32 4294901760, %v952_v20 }
 0x10e   : > { %991 = vmatmul.f32.gmra.mxu1 %v951_v19 }
 0x10f   : > { %1053 = vmatmul.f32.gmra.mxu3 %v953_v21  ;;  %v954_v22 = vsub.f32 %v952_v20, %v953_v21 }
 0x111   : > { %v955_v23 = vand.u32 4294901760, %v954_v22 }
 0x113   : > { %956 = vmatmul.f32.gmra.mxu0 %v955_v23 }
 0x116   : > { %1107 = vmatmul.f32.vlgmr.msra.gmra.mxu1 %v943_v9 }
 0x11b   : > { %1080 = vmatmul.f32.vlgmr.msra.gmra.mxu0 %v943_v9 }
 0x11e   : > { %1111 = vmatmul.f32.gmra.mxu1 %v951_v19 }
 0x123   : > { %1084 = vmatmul.f32.gmra.mxu0 %v951_v19 }
 0x14e   : > { %v1375_v24 = vpop.permute.xlu2 %1374 }
 0x14f   : > { %v1382_v25 = vsel %vm912_vm2, %v1375_v24, 0 }
 0x150   : > { %v3953_v27 = vand.u32 4294901760, %v1382_v25 }
 0x152   : > { %v3957_v29 = vsub.f32 %v1382_v25, %v3953_v27 }
 0x154   : > { %v1435_v33 = vand.u32 4294901760, %v3957_v29 }
 0x156   : > { %v1373_v26 = vpop.permute.xlu2 %1372  ;;  %v1436_v37 = vsub.f32 %v3957_v29, %v1435_v33 }
 0x157   : > { %v1380_v28 = vsel %vm912_vm2, %v1373_v26, 0 }
 0x158   : > { %v3959_v30 = vand.u32 4294901760, %v1380_v28  ;;  %v1437_v44 = vand.u32 4294901760, %v1436_v37 }
 0x15a   : > { %v3963_v34 = vsub.f32 %v1380_v28, %v3959_v30 }
 0x15c   : > { %v1441_v38 = vand.u32 4294901760, %v3963_v34 }
 0x15e   : > { %v1442_v46 = vsub.f32 %v3963_v34, %v1441_v38 }
 0x160   : > { %v1443_v49 = vand.u32 4294901760, %v1442_v46 }
 0x166   : > { %v1137_v31 = vpop.permute.xlu1 %1136 }
 0x167   : > { %v1160_v32 = vand.u32 4294901760, %v1137_v31 }
 0x169   : > { %v1196_v35 = vsub.f32 %v1137_v31, %v1160_v32  ;;  %1161 = vmatpush.msrb.mxu2 %v1160_v32  ;;  %1262 = vmatpush.msrb.mxu1 %v1160_v32 }
 0x16b   : > { %v1197_v36 = vand.u32 4294901760, %v1196_v35  ;;  %1232 = vmatpush.msrb.mxu0 %v1196_v35 }
 0x16d   : > { %v1198_v40 = vsub.f32 %v1196_v35, %v1197_v36 }
 0x16e   : > { %v1135_v41 = vpop.permute.xlu1 %1134 }
 0x16f   : > { %v1199_v42 = vand.u32 4294901760, %v1198_v40  ;;  %v1162_v43 = vand.u32 4294901760, %v1135_v41 }
 0x171   : > { %v1202_v45 = vsub.f32 %v1135_v41, %v1162_v43  ;;  %1163 = vmatpush.msrb.mxu2 %v1162_v43  ;;  %1200 = vmatpush.msrb.mxu3 %v1199_v42 }
 0x172   : > { %1264 = vmatpush.msrb.mxu1 %v1162_v43 }
 0x173   : > { %1295 = vmatpush.msra.mxu2 %v1197_v36  ;;  %1235 = vmatpush.msrb.mxu0 %v1202_v45  ;;  %v1203_v48 = vand.u32 4294901760, %v1202_v45 }
 0x174   : > { %1438 = vmatpush.xpose.msra.mxu1 %v1437_v44 }
 0x175   : > { %1399 = vmatpush.xpose.msra.mxu0 %v3953_v27  ;;  %1299 = vmatpush.msra.mxu2 %v1203_v48  ;;  %v1204_v50 = vsub.f32 %v1202_v45, %v1203_v48 }
 0x177   : > { %v1205_v51 = vand.u32 4294901760, %v1204_v50 }
 0x178   : > { %1444 = vmatpush.xpose.msra.mxu1 %v1443_v49 }
 0x179   : > { %1401 = vmatpush.xpose.msra.mxu0 %v3959_v30  ;;  %1206 = vmatpush.msrb.mxu3 %v1205_v51 }
 0x17b   : > { %1324 = vmatpush.msra.mxu3 %v1160_v32 }
 0x17d   : > { %1326 = vmatpush.msra.mxu3 %v1162_v43 }
 0x183   : > { %v988_v52 = vpop.f32.mrf.mxu1 }
 0x188   : > { %v949_v53 = vpop.f32.mrf.mxu0  ;;  %v1018_v56 = vpop.f32.mrf.mxu2 }
 0x189   : > { %v989_v55 = vadd.f32 %v988_v52, %v949_v53 }
 0x18a   : > { %v1048_v59 = vpop.f32.mrf.mxu3 }
 0x18b   : > { %v992_v54 = vpop.f32.mrf.mxu1  ;;  %v1019_v58 = vadd.f32 %v1018_v56, %v989_v55 }
 0x18d   : > { %v1049_v60 = vadd.f32 %v1048_v59, %v1019_v58 }
 0x190   : > { %v957_v57 = vpop.f32.mrf.mxu0  ;;  %v1023_v1 = vpop.f32.mrf.mxu2 }
 0x191   : > { %v993_v61 = vadd.f32 %v992_v54, %v957_v57 }
 0x192   : > { %v1054_v6 = vpop.f32.mrf.mxu3 }
 0x193   : > { %v1108_v62 = vpop.f32.mrf.mxu1  ;;  %v1024_v2 = vadd.f32 %v1023_v1, %v993_v61 }
 0x195   : > { %v1055_v7 = vadd.f32 %v1054_v6, %v1024_v2 }
 0x198   : > { %v1081_v63 = vpop.f32.mrf.mxu0 }
 0x199   : > { %v1082_v0 = vadd.f32 %v1081_v63, %v1049_v60 }
 0x19b   : > { %v1109_v3 = vadd.f32 %v1108_v62, %v1082_v0  ;;  %v1112_v10 = vpop.f32.mrf.mxu1 }
 0x19d   : > { %v1116_v5 = vsel %vm1115_vm3, %v1109_v3, -inf }
 0x19e   : > { %1117 = vmax.xlane.f32.xlu0 %v1116_v5 }
 0x1a0   : > { %v1085_v8 = vpop.f32.mrf.mxu0 }
 0x1a1   : > { %v1086_v9 = vadd.f32 %v1085_v8, %v1055_v7 }
 0x1a3   : > { %v1113_v11 = vadd.f32 %v1112_v10, %v1086_v9 }
 0x1a5   : > { %v1119_v12 = vsel %vm1115_vm3, %v1113_v11, -inf }
 0x1a6   : > { %1120 = vmax.xlane.f32.xlu0 %v1119_v12 }
 0x1ba   : > { %1368 = vrot.lane.b32.xlu0 %v3942_v4, %s3592_s15  ;;  %s3020_s15 = sshll.u32 %s3017_s24, 4  ;;  %s3021_s15 = int_to_ptr.hbm [resolvable:$true] %s3020_s15 }
 0x1bb   : > { %s3505_s4 = sshra.s32 %s3021_s15, 4  ;;  %s3506_s4 = int_to_ptr.hbm [resolvable:$true] %s3505_s4 }
 0x1bc   : > { %s3507_s16 = scalar_lea.hbm %s3506_s4, 16  ;;  %p3512_p10 = scmp.lt.s32.totalorder %s3506_s4, %s4246_s8 }
 0x1bd   : > { %p3508_p1 = scmp.ne.s32.totalorder %s3506_s4, %s3507_s16 }
 0x1bf   : > { %p3509_p4 = pnand %p3508_p1, %p3748_p5 }
 0x1c1   : > { %p3510_p8 = pneg %p3509_p4 }
 0x1c2   : > { %1594 = vrot.lane.b32.xlu0 %v3932_v47, %s3594_s19 }
 0x1ca   : > { %1592 = vrot.lane.b32.xlu0 %v3928_v39, %s3594_s19 }
 0x1d2   : > { %1841 = vrot.lane.b32.xlu0 %v3932_v47, %s3595_s12 }
 0x1da   : > { %1835 = vrot.lane.b32.xlu0 %v3942_v4, %s3595_s12 }
 0x211   : > { %v1118_v13 = vpop.xlane.xlu0 %1117 }
 0x212   : > { %v1122_v14 = vsub.f32 %v1109_v3, %v1118_v13 }
 0x214   : > { %v1124_v16 = vmul.f32 1.442695, %v1122_v14 }
 0x216   : > { %3309 = vpow2.f32 %v1124_v16 }
 0x219   : > { %v1121_v17 = vpop.xlane.xlu0 %1120 }
 0x21a   : > { %v1123_v18 = vsub.f32 %v1113_v11, %v1121_v17 }
 0x21c   : > { %v3984_v19 = vpop.eup %3309  ;;  %v1126_v20 = vmul.f32 1.442695, %v1123_v18 }
 0x21d   : > { %v1141_v21 = vsel %vm1115_vm3, %v3984_v19, 0 }
 0x21e   : > { %3311 = vpow2.f32 %v1126_v20  ;;  %v1164_v22 = vand.u32 4294901760, %v1141_v21 }
 0x220   : > { %1208 = vmatmul.f32.vlgmr.msrb.gmra.mxu3 %v1164_v22  ;;  %v1165_v23 = vsub.f32 %v1141_v21, %v1164_v22 }
 0x221   : > { %1500 = vmatpush.xpose.msrb.mxu3 %v3953_v27 }
 0x222   : > { %1238 = vmatmul.f32.vlgmr.msrb.gmra.mxu0 %v1165_v23  ;;  %v1166_v24 = vand.u32 4294901760, %v1165_v23 }
 0x223   : > { %1533 = vmatpush.xpose.msrb.mxu0 %v1435_v33  ;;  %v1371_v33 = vpop.permute.xlu1 %1370 }
 0x224   : > { %v3991_v25 = vpop.eup %3311  ;;  %1268 = vmatmul.f32.vlgmr.msrb.gmra.mxu1 %v1166_v24  ;;  %v1167_v26 = vsub.f32 %v1165_v23, %v1166_v24 }
 0x225   : > { %1502 = vmatpush.xpose.msrb.mxu3 %v3959_v30  ;;  %1562 = vmatpush.xpose.msrb.mxu1 %v3953_v27  ;;  %v1144_v28 = vsel %vm1115_vm3, %v3991_v25, 0  ;;  %v1378_v27 = vsel %vm912_vm2, %v1371_v33, 0 }
 0x226   : > { %v1168_v31 = vand.u32 4294901760, %v1167_v26  ;;  %v1172_v32 = vand.u32 4294901760, %v1144_v28  ;;  %v1410_v43 = vand.u32 4294901760, %v1378_v27 }
 0x227   : > { %1537 = vmatpush.xpose.msrb.mxu0 %v1441_v38 }
 0x228   : > { %1169 = vmatmul.f32.vlgmr.msrb.gmra.mxu2 %v1168_v31  ;;  %1212 = vmatmul.f32.gmra.mxu3 %v1172_v32  ;;  %v1173_v35 = vsub.f32 %v1144_v28, %v1172_v32  ;;  %v1411_v45 = vsub.f32 %v1378_v27, %v1410_v43 }
 0x229   : > { %1470 = vmatpush.xpose.msrb.mxu2 %v3957_v29  ;;  %1564 = vmatpush.xpose.msrb.mxu1 %v3959_v30 }
 0x22a   : > { %1243 = vmatmul.f32.gmra.mxu0 %v1173_v35  ;;  %v1174_v36 = vand.u32 4294901760, %v1173_v35  ;;  %v1412_v51 = vand.u32 4294901760, %v1411_v45 }
 0x22c   : > { %1274 = vmatmul.f32.gmra.mxu1 %v1174_v36  ;;  %v1369_v37 = vpop.permute.xlu0 %1368  ;;  %v1175_v40 = vsub.f32 %v1173_v35, %v1174_v36  ;;  %v1413_v53 = vsub.f32 %v1411_v45, %v1412_v51 }
 0x22d   : > { %1473 = vmatpush.xpose.msrb.mxu2 %v3963_v34  ;;  %v1376_v41 = vsel %vm912_vm2, %v1369_v37, 0 }
 0x22e   : > { %v1402_v38 = vand.u32 4294901760, %v1376_v41  ;;  %v1176_v42 = vand.u32 4294901760, %v1175_v40  ;;  %v1414_v58 = vand.u32 4294901760, %v1413_v53 }
 0x230   : > { %v1403_v44 = vsub.f32 %v1376_v41, %v1402_v38  ;;  %1177 = vmatmul.f32.gmra.mxu2 %v1176_v42  ;;  %1328 = vmatmul.f32.vlgmr.msra.gmra.mxu3 %v1164_v22 }
 0x232   : > { %v1404_v29 = vand.u32 4294901760, %v1403_v44 }
 0x234   : > { %v1405_v30 = vsub.f32 %v1403_v44, %v1404_v29  ;;  %1446 = vmatmul.f32.vlgmr.msra.gmra.mxu1 %v1402_v38  ;;  %v1595_v46 = vpop.permute.xlu0 %1594 }
 0x235   : > { %v1618_v48 = vand.u32 4294901760, %v1595_v46 }
 0x236   : > { %v1406_v49 = vand.u32 4294901760, %v1405_v30 }
 0x237   : > { %v1654_v50 = vsub.f32 %v1595_v46, %v1618_v48  ;;  %1720 = vmatpush.msra.mxu1 %v1618_v48 }
 0x238   : > { %1301 = vmatmul.f32.vlgmr.msra.gmra.mxu2 %v1164_v22  ;;  %1332 = vmatmul.f32.gmra.mxu3 %v1172_v32 }
 0x239   : > { %v1655_v34 = vand.u32 4294901760, %v1654_v50  ;;  %1407 = vmatmul.f32.vlgmr.msra.gmra.mxu0 %v1406_v49  ;;  %1619 = vmatpush.msra.mxu2 %v1618_v48 }
 0x23a   : > { %1690 = vmatpush.msra.mxu0 %v1654_v50 }
 0x23b   : > { %v1656_v52 = vsub.f32 %v1654_v50, %v1655_v34 }
 0x23c   : > { %1450 = vmatmul.f32.gmra.mxu1 %v1410_v43  ;;  %v1593_v54 = vpop.permute.xlu0 %1592 }
 0x23d   : > { %v1657_v55 = vand.u32 4294901760, %v1656_v52  ;;  %v1620_v56 = vand.u32 4294901760, %v1593_v54 }
 0x23f   : > { %v1660_v57 = vsub.f32 %v1593_v54, %v1620_v56  ;;  %1621 = vmatpush.msra.mxu2 %v1620_v56  ;;  %1658 = vmatpush.msra.mxu3 %v1657_v55 }
 0x240   : > { %1722 = vmatpush.msra.mxu1 %v1620_v56  ;;  %1305 = vmatmul.f32.gmra.mxu2 %v1172_v32 }
 0x241   : > { %v1661_v59 = vand.u32 4294901760, %v1660_v57  ;;  %1415 = vmatmul.f32.gmra.mxu0 %v1414_v58  ;;  %1506 = vmatmul.f32.vlgmr.msrb.gmra.mxu3 %v1404_v29 }
 0x242   : > { %1693 = vmatpush.msra.mxu0 %v1660_v57 }
 0x243   : > { %v1662_v60 = vsub.f32 %v1660_v57, %v1661_v59 }
 0x244   : > { %1566 = vmatmul.f32.vlgmr.msrb.gmra.mxu1 %v1402_v38  ;;  %v1842_v61 = vpop.permute.xlu0 %1841 }
 0x245   : > { %v1849_v62 = vsel %vm912_vm2, %v1842_v61, 0  ;;  %v1663_v63 = vand.u32 4294901760, %v1662_v60 }
 0x246   : > { %v4005_v0 = vand.u32 4294901760, %v1849_v62 }
 0x247   : > { %1664 = vmatpush.msra.mxu3 %v1663_v63 }
 0x248   : > { %v4008_v1 = vsub.f32 %v1849_v62, %v4005_v0  ;;  %1476 = vmatmul.f32.vlgmr.msrb.gmra.mxu2 %v1403_v44 }
 0x249   : > { %1782 = vmatpush.msrb.mxu3 %v1618_v48  ;;  %1539 = vmatmul.f32.vlgmr.msrb.gmra.mxu0 %v1402_v38 }
 0x24a   : > { %1512 = vmatmul.f32.gmra.mxu3 %v1412_v51  ;;  %v1902_v2 = vand.u32 4294901760, %v4008_v1  ;;  %1753 = vmatpush.msrb.mxu2 %v1655_v34 }
 0x24b   : > { %1866 = vmatpush.xpose.msrb.mxu0 %v4005_v0  ;;  %1784 = vmatpush.msrb.mxu3 %v1620_v56 }
 0x24c   : > { %v1903_v3 = vsub.f32 %v4008_v1, %v1902_v2  ;;  %1757 = vmatpush.msrb.mxu2 %v1661_v59  ;;  %1570 = vmatmul.f32.gmra.mxu1 %v1410_v43  ;;  %v1836_v62 = vpop.permute.xlu0 %1835 }
 0x24e   : > { %v1904_v5 = vand.u32 4294901760, %v1903_v3 }
 0x250   : > { %1481 = vmatmul.f32.gmra.mxu2 %v1411_v45  ;;  %1905 = vmatpush.xpose.msrb.mxu1 %v1904_v5 }
 0x251   : > { %1543 = vmatmul.f32.gmra.mxu0 %v1410_v43 }
 0x29f   : > { %v1239_v7 = vpop.f32.mrf.mxu0 }
 0x2a1   : > { %v1269_v8 = vpop.f32.mrf.mxu1 }
 0x2a3   : > { %v1209_v6 = vpop.f32.mrf.mxu3 }
 0x2a7   : > { %v1244_v14 = vpop.f32.mrf.mxu0 }
 0x2a9   : > { %v1275_v16 = vpop.f32.mrf.mxu1 }
 0x2ab   : > { %v1170_v9 = vpop.f32.mrf.mxu2  ;;  %v1213_v11 = vpop.f32.mrf.mxu3 }
 0x2ac   : > { %v1210_v10 = vadd.f32 %v1209_v6, %v1170_v9 }
 0x2ae   : > { %v1240_v12 = vadd.f32 %v1239_v7, %v1210_v10 }
 0x2b0   : > { %v1270_v13 = vadd.f32 %v1269_v8, %v1240_v12  ;;  %v1843_v8 = vsel %vm912_vm2, %v1836_v62, 0 }
 0x2b1   : > { %v1447_v24 = vpop.f32.mrf.mxu1  ;;  %v4037_v12 = vand.u32 4294901760, %v1843_v8 }
 0x2b3   : > { %v1178_v17 = vpop.f32.mrf.mxu2  ;;  %v1329_v21 = vpop.f32.mrf.mxu3 }
 0x2b4   : > { %v1214_v18 = vadd.f32 %v1213_v11, %v1178_v17 }
 0x2b6   : > { %v1245_v20 = vadd.f32 %v1244_v14, %v1214_v18  ;;  %v1408_v23 = vpop.f32.mrf.mxu0 }
 0x2b7   : > { %v1448_v40 = vadd.f32 %v1447_v24, %v1408_v23 }
 0x2b8   : > { %v1276_v22 = vadd.f32 %v1275_v16, %v1245_v20  ;;  %v1870_v20 = vsub.f32 %v1843_v8, %v4037_v12 }
 0x2b9   : > { %v1451_v27 = vpop.f32.mrf.mxu1 }
 0x2bb   : > { %v1302_v26 = vpop.f32.mrf.mxu2  ;;  %v1333_v32 = vpop.f32.mrf.mxu3 }
 0x2bc   : > { %v1303_v28 = vadd.f32 %v1302_v26, %v1270_v13  ;;  %v1871_v26 = vand.u32 4294901760, %v1870_v20 }
 0x2be   : > { %v4015_v31 = vadd.f32 %v1329_v21, %v1303_v28  ;;  %v1416_v35 = vpop.f32.mrf.mxu0 }
 0x2bf   : > { %v1452_v30 = vadd.f32 %v1451_v27, %v1416_v35 }
 0x2c1   : > { %v1567_v29 = vpop.f32.mrf.mxu1 }
 0x2c3   : > { %v1306_v33 = vpop.f32.mrf.mxu2 }
 0x2c4   : > { %v1307_v36 = vadd.f32 %v1306_v33, %v1276_v22  ;;  %v1507_v41 = vpop.f32.mrf.mxu3 }
 0x2c6   : > { %v4017_v37 = vadd.f32 %v1333_v32, %v1307_v36  ;;  %v1540_v43 = vpop.f32.mrf.mxu0  ;;  %v1872_v32 = vsub.f32 %v1870_v20, %v1871_v26 }
 0x2c8   : > { %v1873_v36 = vand.u32 4294901760, %v1872_v32 }
 0x2c9   : > { %v1571_v54 = vpop.f32.mrf.mxu1 }
 0x2cb   : > { %v1477_v38 = vpop.f32.mrf.mxu2 }
 0x2cc   : > { %v1478_v42 = vadd.f32 %v1477_v38, %v1448_v40 }
 0x2cd   : > { %v1513_v51 = vpop.f32.mrf.mxu3 }
 0x2ce   : > { %v1508_v44 = vadd.f32 %v1507_v41, %v1478_v42  ;;  %v1544_v52 = vpop.f32.mrf.mxu0 }
 0x2d0   : > { %v1541_v45 = vadd.f32 %v1540_v43, %v1508_v44 }
 0x2d2   : > { %v1568_v46 = vadd.f32 %v1567_v29, %v1541_v45 }
 0x2d3   : > { %v1482_v48 = vpop.f32.mrf.mxu2 }
 0x2d4   : > { %v1483_v49 = vadd.f32 %v1482_v48, %v1452_v30  ;;  %v1574_v50 = vsel %vm1115_vm3, %v1568_v46, -inf }
 0x2d5   : > { %1575 = vmax.xlane.f32.xlu2 %v1574_v50 }
 0x2d6   : > { %v1514_v34 = vadd.f32 %v1513_v51, %v1483_v49 }
 0x2d8   : > { %v1545_v53 = vadd.f32 %v1544_v52, %v1514_v34 }
 0x2da   : > { %v1572_v55 = vadd.f32 %v1571_v54, %v1545_v53 }
 0x2dc   : > { %v1577_v56 = vsel %vm1115_vm3, %v1572_v55, -inf }
 0x2dd   : > { %1578 = vmax.xlane.f32.xlu1 %v1577_v56 }
 0x2ed   : > { %1839 = vrot.lane.b32.xlu2 %v3928_v39, %s3595_s12 }
 0x2f6   : > { %1837 = vrot.lane.b32.xlu1 %v3946_v15, %s3595_s12 }
 0x2fe   : > { %2061 = vrot.lane.b32.xlu1 %v3932_v47, %s3596_s20 }
 0x306   : > { %2059 = vrot.lane.b32.xlu1 %v3928_v39, %s3596_s20  ;;  %s3511_s20 = scalar_lea.hbm %s4246_s8, 32 }
 0x307   : > { %p3513_p12 = scmp.lt.s32.totalorder %s3511_s20, %s3507_s16 }
 0x309   : > { %p3514_p13 = por %p3513_p12, %p3512_p10 }
 0x30b   : > { %p3515_p0 = pnand %p3514_p13, %p3510_p8 }
 0x30e   : > { %2308 = vrot.lane.b32.xlu1 %v3932_v47, %s3597_s22 }
 0x316   : > { %2302 = vrot.lane.b32.xlu1 %v3942_v4, %s3597_s22 }
 0x348   : > { %v1576_v57 = vpop.xlane.xlu2 %1575 }
 0x349   : > { %v1580_v58 = vsub.f32 %v1568_v46, %v1576_v57 }
 0x34b   : > { %v1582_v59 = vmul.f32 1.442695, %v1580_v58 }
 0x34d   : > { %3313 = vpow2.f32 %v1582_v59 }
 0x350   : > { %v1840_v60 = vpop.permute.xlu2 %1839  ;;  %v1579_v61 = vpop.xlane.xlu1 %1578 }
 0x351   : > { %v1847_v63 = vsel %vm912_vm2, %v1840_v60, 0  ;;  %v1581_v3 = vsub.f32 %v1572_v55, %v1579_v61 }
 0x352   : > { %v1867_v5 = vand.u32 4294901760, %v1847_v63 }
 0x353   : > { %v4032_v6 = vpop.eup %3313  ;;  %v1584_v7 = vmul.f32 1.442695, %v1581_v3 }
 0x354   : > { %v1907_v9 = vsub.f32 %v1847_v63, %v1867_v5  ;;  %1868 = vmatpush.xpose.msrb.mxu0 %v1867_v5  ;;  %v1599_v4 = vsel %vm1115_vm3, %v4032_v6, 0 }
 0x355   : > { %3315 = vpow2.f32 %v1584_v7  ;;  %v1622_v10 = vand.u32 4294901760, %v1599_v4 }
 0x356   : > { %v1908_v11 = vand.u32 4294901760, %v1907_v9 }
 0x357   : > { %1666 = vmatmul.f32.vlgmr.msra.gmra.mxu3 %v1622_v10  ;;  %v1623_v13 = vsub.f32 %v1599_v4, %v1622_v10 }
 0x358   : > { %1967 = vmatpush.xpose.msra.mxu3 %v4005_v0  ;;  %v1909_v14 = vsub.f32 %v1907_v9, %v1908_v11 }
 0x359   : > { %1696 = vmatmul.f32.vlgmr.msra.gmra.mxu0 %v1623_v13  ;;  %v1624_v16 = vand.u32 4294901760, %v1623_v13 }
 0x35a   : > { %2000 = vmatpush.xpose.msra.mxu0 %v1902_v2  ;;  %v1910_v17 = vand.u32 4294901760, %v1909_v14 }
 0x35b   : > { %v4042_v18 = vpop.eup %3315  ;;  %1726 = vmatmul.f32.vlgmr.msra.gmra.mxu1 %v1624_v16  ;;  %v1625_v21 = vsub.f32 %v1623_v13, %v1624_v16 }
 0x35c   : > { %1969 = vmatpush.xpose.msra.mxu3 %v1867_v5  ;;  %1911 = vmatpush.xpose.msrb.mxu1 %v1910_v17  ;;  %v1602_v22 = vsel %vm1115_vm3, %v4042_v18, 0 }
 0x35d   : > { %v1626_v23 = vand.u32 4294901760, %v1625_v21  ;;  %v1630_v24 = vand.u32 4294901760, %v1602_v22 }
 0x35e   : > { %2004 = vmatpush.xpose.msra.mxu0 %v1908_v11 }
 0x35f   : > { %1627 = vmatmul.f32.vlgmr.msra.gmra.mxu2 %v1626_v23  ;;  %1670 = vmatmul.f32.gmra.mxu3 %v1630_v24  ;;  %v1631_v2 = vsub.f32 %v1602_v22, %v1630_v24 }
 0x360   : > { %2029 = vmatpush.xpose.msra.mxu1 %v4005_v0  ;;  %1937 = vmatpush.xpose.msra.mxu2 %v4008_v1 }
 0x361   : > { %1701 = vmatmul.f32.gmra.mxu0 %v1631_v2  ;;  %v1632_v28 = vand.u32 4294901760, %v1631_v2 }
 0x363   : > { %1732 = vmatmul.f32.gmra.mxu1 %v1632_v28  ;;  %v1633_v35 = vsub.f32 %v1631_v2, %v1632_v28 }
 0x364   : > { %2031 = vmatpush.xpose.msra.mxu1 %v1867_v5  ;;  %1940 = vmatpush.xpose.msra.mxu2 %v1907_v9 }
 0x365   : > { %v1634_v33 = vand.u32 4294901760, %v1633_v35 }
 0x367   : > { %1635 = vmatmul.f32.gmra.mxu2 %v1634_v33  ;;  %1786 = vmatmul.f32.vlgmr.msrb.gmra.mxu3 %v1622_v10 }
 0x368   : > { %v1838_v0 = vpop.permute.xlu1 %1837 }
 0x369   : > { %v1845_v27 = vsel %vm912_vm2, %v1838_v0, 0  ;;  %1874 = vmatmul.f32.vlgmr.msrb.gmra.mxu0 %v1873_v36 }
 0x36a   : > { %v1877_v40 = vand.u32 4294901760, %v1845_v27 }
 0x36b   : > { %1913 = vmatmul.f32.vlgmr.msrb.gmra.mxu1 %v4037_v12 }
 0x36c   : > { %v1878_v41 = vsub.f32 %v1845_v27, %v1877_v40 }
 0x36e   : > { %v1879_v1 = vand.u32 4294901760, %v1878_v41 }
 0x36f   : > { %1759 = vmatmul.f32.vlgmr.msrb.gmra.mxu2 %v1622_v10  ;;  %1790 = vmatmul.f32.gmra.mxu3 %v1630_v24 }
 0x370   : > { %v2062_v38 = vpop.permute.xlu1 %2061  ;;  %v1880_v42 = vsub.f32 %v1878_v41, %v1879_v1 }
 0x371   : > { %v2085_v43 = vand.u32 4294901760, %v2062_v38 }
 0x372   : > { %v1881_v44 = vand.u32 4294901760, %v1880_v42 }
 0x373   : > { %v2121_v29 = vsub.f32 %v2062_v38, %v2085_v43  ;;  %1917 = vmatmul.f32.gmra.mxu1 %v1877_v40  ;;  %2086 = vmatpush.msrb.mxu2 %v2085_v43 }
 0x374   : > { %2187 = vmatpush.msrb.mxu1 %v2085_v43  ;;  %1882 = vmatmul.f32.gmra.mxu0 %v1881_v44 }
 0x375   : > { %v2122_v45 = vand.u32 4294901760, %v2121_v29  ;;  %2157 = vmatpush.msrb.mxu0 %v2121_v29 }
 0x377   : > { %v2123_v30 = vsub.f32 %v2121_v29, %v2122_v45  ;;  %1763 = vmatmul.f32.gmra.mxu2 %v1630_v24  ;;  %1973 = vmatmul.f32.vlgmr.msra.gmra.mxu3 %v1871_v26 }
 0x378   : > { %v2060_v46 = vpop.permute.xlu1 %2059 }
 0x379   : > { %v2124_v48 = vand.u32 4294901760, %v2123_v30  ;;  %v2087_v49 = vand.u32 4294901760, %v2060_v46 }
 0x37b   : > { %v2127_v50 = vsub.f32 %v2060_v46, %v2087_v49  ;;  %2033 = vmatmul.f32.vlgmr.msra.gmra.mxu1 %v4037_v12  ;;  %2088 = vmatpush.msrb.mxu2 %v2087_v49 }
 0x37c   : > { %2125 = vmatpush.msrb.mxu3 %v2124_v48  ;;  %2189 = vmatpush.msrb.mxu1 %v2087_v49 }
 0x37d   : > { %2006 = vmatmul.f32.vlgmr.msra.gmra.mxu0 %v4037_v12  ;;  %v2128_v51 = vand.u32 4294901760, %v2127_v50 }
 0x37e   : > { %2160 = vmatpush.msrb.mxu0 %v2127_v50 }
 0x37f   : > { %1943 = vmatmul.f32.vlgmr.msra.gmra.mxu2 %v1870_v20  ;;  %1979 = vmatmul.f32.gmra.mxu3 %v1879_v1  ;;  %v2129_v34 = vsub.f32 %v2127_v50, %v2128_v51 }
 0x380   : > { %2220 = vmatpush.msra.mxu2 %v2122_v45  ;;  %v2309_v52 = vpop.permute.xlu1 %2308 }
 0x381   : > { %v2316_v53 = vsel %vm912_vm2, %v2309_v52, 0  ;;  %v2130_v54 = vand.u32 4294901760, %v2129_v34  ;;  %v1586_v34 = vsel %vm1115_vm3, %v4032_v6, 0.0 }
 0x382   : > { %v4054_v55 = vand.u32 4294901760, %v2316_v53  ;;  %2224 = vmatpush.msra.mxu2 %v2128_v51 }
 0x383   : > { %2037 = vmatmul.f32.gmra.mxu1 %v1877_v40  ;;  %2131 = vmatpush.msrb.mxu3 %v2130_v54 }
 0x384   : > { %v4057_v56 = vsub.f32 %v2316_v53, %v4054_v55  ;;  %2333 = vmatpush.xpose.msra.mxu0 %v4054_v55 }
 0x385   : > { %2249 = vmatpush.msra.mxu3 %v2085_v43  ;;  %2010 = vmatmul.f32.gmra.mxu0 %v1877_v40 }
 0x386   : > { %v2369_v57 = vand.u32 4294901760, %v4057_v56 }
 0x387   : > { %2251 = vmatpush.msra.mxu3 %v2087_v49  ;;  %1948 = vmatmul.f32.gmra.mxu2 %v1878_v41 }
 0x388   : > { %v2370_v58 = vsub.f32 %v4057_v56, %v2369_v57 }
 0x38a   : > { %v2371_v59 = vand.u32 4294901760, %v2370_v58 }
 0x38c   : > { %2372 = vmatpush.xpose.msra.mxu1 %v2371_v59 }
 0x3d6   : > { %v1697_v61 = vpop.f32.mrf.mxu0 }
 0x3d8   : > { %v1727_v62 = vpop.f32.mrf.mxu1 }
 0x3da   : > { %v1667_v60 = vpop.f32.mrf.mxu3 }
 0x3de   : > { %v1702_v8 = vpop.f32.mrf.mxu0 }
 0x3e0   : > { %v1733_v4 = vpop.f32.mrf.mxu1 }
 0x3e2   : > { %v1628_v63 = vpop.f32.mrf.mxu2  ;;  %v1671_v5 = vpop.f32.mrf.mxu3 }
 0x3e3   : > { %v1668_v3 = vadd.f32 %v1667_v60, %v1628_v63  ;;  %v2303_v60 = vpop.permute.xlu1 %2302 }
 0x3e5   : > { %v1698_v7 = vadd.f32 %v1697_v61, %v1668_v3 }
 0x3e6   : > { %v1875_v16 = vpop.f32.mrf.mxu0 }
 0x3e7   : > { %v1728_v9 = vadd.f32 %v1727_v62, %v1698_v7 }
 0x3e8   : > { %v1914_v17 = vpop.f32.mrf.mxu1 }
 0x3e9   : > { %v1915_v35 = vadd.f32 %v1914_v17, %v1875_v16 }
 0x3ea   : > { %v1636_v10 = vpop.f32.mrf.mxu2  ;;  %v1787_v13 = vpop.f32.mrf.mxu3 }
 0x3eb   : > { %v1672_v11 = vadd.f32 %v1671_v5, %v1636_v10 }
 0x3ed   : > { %v1703_v12 = vadd.f32 %v1702_v8, %v1672_v11 }
 0x3ef   : > { %v1734_v14 = vadd.f32 %v1733_v4, %v1703_v12 }
 0x3f0   : > { %v1918_v28 = vpop.f32.mrf.mxu1 }
 0x3f1   : > { %v1883_v24 = vpop.f32.mrf.mxu0 }
 0x3f2   : > { %v1760_v20 = vpop.f32.mrf.mxu2  ;;  %v1791_v23 = vpop.f32.mrf.mxu3  ;;  %v1919_v38 = vadd.f32 %v1918_v28, %v1883_v24 }
 0x3f3   : > { %v1761_v21 = vadd.f32 %v1760_v20, %v1728_v9 }
 0x3f5   : > { %v4064_v22 = vadd.f32 %v1787_v13, %v1761_v21 }
 0x3f8   : > { %v2034_v41 = vpop.f32.mrf.mxu1 }
 0x3fa   : > { %v1764_v26 = vpop.f32.mrf.mxu2  ;;  %v1974_v33 = vpop.f32.mrf.mxu3 }
 0x3fb   : > { %v1765_v2 = vadd.f32 %v1764_v26, %v1734_v14  ;;  %v2007_v27 = vpop.f32.mrf.mxu0 }
 0x3fd   : > { %v4066_v32 = vadd.f32 %v1791_v23, %v1765_v2 }
 0x400   : > { %v2038_v49 = vpop.f32.mrf.mxu1 }
 0x402   : > { %v1944_v36 = vpop.f32.mrf.mxu2  ;;  %v1980_v45 = vpop.f32.mrf.mxu3 }
 0x403   : > { %v1945_v0 = vadd.f32 %v1944_v36, %v1915_v35  ;;  %v2011_v46 = vpop.f32.mrf.mxu0 }
 0x405   : > { %v1975_v40 = vadd.f32 %v1974_v33, %v1945_v0 }
 0x407   : > { %v2008_v1 = vadd.f32 %v2007_v27, %v1975_v40 }
 0x409   : > { %v2035_v42 = vadd.f32 %v2034_v41, %v2008_v1 }
 0x40a   : > { %v1949_v43 = vpop.f32.mrf.mxu2 }
 0x40b   : > { %v1950_v44 = vadd.f32 %v1949_v43, %v1919_v38  ;;  %v2041_v29 = vsel %vm1115_vm3, %v2035_v42, -inf }
 0x40c   : > { %2042 = vmax.xlane.f32.xlu0 %v2041_v29 }
 0x40d   : > { %v1981_v30 = vadd.f32 %v1980_v45, %v1950_v44 }
 0x40f   : > { %v2012_v48 = vadd.f32 %v2011_v46, %v1981_v30 }
 0x411   : > { %v2039_v50 = vadd.f32 %v2038_v49, %v2012_v48 }
 0x413   : > { %v2044_v51 = vsel %vm1115_vm3, %v2039_v50, -inf }
 0x414   : > { %2045 = vmax.xlane.f32.xlu2 %v2044_v51 }
 0x420   : > { %2306 = vrot.lane.b32.xlu0 %v3928_v39, %s3597_s22 }
 0x42c   : > { %2304 = vrot.lane.b32.xlu2 %v3946_v15, %s3597_s22 }
 0x434   : > { %2528 = vrot.lane.b32.xlu2 %v3932_v47, %s3598_s23  ;;  %v2310_v47 = vsel %vm912_vm2, %v2303_v60, 0 }
 0x435   : > { %v4087_v63 = vand.u32 4294901760, %v2310_v47 }
 0x437   : > { %v4093_v4 = vsub.f32 %v2310_v47, %v4087_v63 }
 0x439   : > { %v2338_v21 = vand.u32 4294901760, %v4093_v4 }
 0x43b   : > { %v2339_v0 = vsub.f32 %v4093_v4, %v2338_v21 }
 0x43c   : > { %2526 = vrot.lane.b32.xlu2 %v3928_v39, %s3598_s23 }
 0x465   : > { %1587 = vadd.xlane.f32.xlu2 %v1586_v34 }
 0x47f   : > { %v2043_v52 = vpop.xlane.xlu0 %2042 }
 0x480   : > { %v2047_v53 = vsub.f32 %v2035_v42, %v2043_v52 }
 0x482   : > { %v2049_v54 = vmul.f32 1.442695, %v2047_v53 }
 0x484   : > { %3317 = vpow2.f32 %v2049_v54 }
 0x487   : > { %v2046_v58 = vpop.xlane.xlu2 %2045 }
 0x488   : > { %v2048_v59 = vsub.f32 %v2039_v50, %v2046_v58 }
 0x48a   : > { %v4078_v61 = vpop.eup %3317  ;;  %v2051_v62 = vmul.f32 1.442695, %v2048_v59 }
 0x48b   : > { %v2066_v15 = vsel %vm1115_vm3, %v4078_v61, 0 }
 0x48c   : > { %3319 = vpow2.f32 %v2051_v62  ;;  %v4083_v39 = vand.u32 4294901760, %v2066_v15 }
 0x48e   : > { %2133 = vmatmul.f32.vlgmr.msrb.gmra.mxu3 %v4083_v39  ;;  %v2090_v6 = vsub.f32 %v2066_v15, %v4083_v39 }
 0x48f   : > { %2434 = vmatpush.xpose.msrb.mxu3 %v4054_v55  ;;  %v2305_v3 = vpop.permute.xlu2 %2304 }
 0x490   : > { %2163 = vmatmul.f32.vlgmr.msrb.gmra.mxu0 %v2090_v6  ;;  %v2091_v5 = vand.u32 4294901760, %v2090_v6  ;;  %v2312_v12 = vsel %vm912_vm2, %v2305_v3, 0 }
 0x491   : > { %v2344_v23 = vand.u32 4294901760, %v2312_v12 }
 0x492   : > { %v4090_v7 = vpop.eup %3319  ;;  %2193 = vmatmul.f32.vlgmr.msrb.gmra.mxu1 %v2091_v5  ;;  %v2307_v8 = vpop.permute.xlu0 %2306  ;;  %v2092_v9 = vsub.f32 %v2090_v6, %v2091_v5 }
 0x493   : > { %v2314_v10 = vsel %vm912_vm2, %v2307_v8, 0  ;;  %v2069_v11 = vsel %vm1115_vm3, %v4090_v7, 0  ;;  %v2345_v27 = vsub.f32 %v2312_v12, %v2344_v23 }
 0x494   : > { %v2334_v13 = vand.u32 4294901760, %v2314_v10  ;;  %v2093_v14 = vand.u32 4294901760, %v2092_v9  ;;  %v2097_v16 = vand.u32 4294901760, %v2069_v11 }
 0x496   : > { %v2374_v17 = vsub.f32 %v2314_v10, %v2334_v13  ;;  %2094 = vmatmul.f32.vlgmr.msrb.gmra.mxu2 %v2093_v14  ;;  %2137 = vmatmul.f32.gmra.mxu3 %v2097_v16  ;;  %v2098_v20 = vsub.f32 %v2069_v11, %v2097_v16 }
 0x497   : > { %2335 = vmatpush.xpose.msra.mxu0 %v2334_v13  ;;  %2404 = vmatpush.xpose.msrb.mxu2 %v4057_v56  ;;  %v2529_v24 = vpop.permute.xlu2 %2528  ;;  %v2340_v56 = vand.u32 4294901760, %v2339_v0 }
 0x498   : > { %2436 = vmatpush.xpose.msrb.mxu3 %v2334_v13  ;;  %v2552_v26 = vand.u32 4294901760, %v2529_v24  ;;  %v2099_v2 = vand.u32 4294901760, %v2098_v20  ;;  %v2375_v28 = vand.u32 4294901760, %v2374_v17  ;;  %2168 = vmatmul.f32.gmra.mxu0 %v2098_v20 }
 0x49a   : > { %v2588_v35 = vsub.f32 %v2529_v24, %v2552_v26  ;;  %2199 = vmatmul.f32.gmra.mxu1 %v2099_v2  ;;  %v2100_v33 = vsub.f32 %v2098_v20, %v2099_v2  ;;  %v2376_v36 = vsub.f32 %v2374_v17, %v2375_v28 }
 0x49b   : > { %2467 = vmatpush.xpose.msrb.mxu0 %v2369_v57  ;;  %2407 = vmatpush.xpose.msrb.mxu2 %v2374_v17  ;;  %v2346_v57 = vand.u32 4294901760, %v2345_v27 }
 0x49c   : > { %v2589_v40 = vand.u32 4294901760, %v2588_v35  ;;  %v2101_v41 = vand.u32 4294901760, %v2100_v33  ;;  %v2377_v1 = vand.u32 4294901760, %v2376_v36 }
 0x49d   : > { %v2347_v45 = vsub.f32 %v2345_v27, %v2346_v57 }
 0x49e   : > { %v2590_v38 = vsub.f32 %v2588_v35, %v2589_v40  ;;  %2102 = vmatmul.f32.gmra.mxu2 %v2101_v41  ;;  %2253 = vmatmul.f32.vlgmr.msra.gmra.mxu3 %v4083_v39 }
 0x49f   : > { %2471 = vmatpush.xpose.msrb.mxu0 %v2375_v28  ;;  %2378 = vmatpush.xpose.msra.mxu1 %v2377_v1  ;;  %v2527_v42 = vpop.permute.xlu2 %2526  ;;  %v2348_v48 = vand.u32 4294901760, %v2347_v45 }
 0x4a0   : > { %v2591_v43 = vand.u32 4294901760, %v2590_v38  ;;  %v2554_v44 = vand.u32 4294901760, %v2527_v42  ;;  %2341 = vmatmul.f32.vlgmr.msra.gmra.mxu0 %v2340_v56 }
 0x4a2   : > { %v2594_v29 = vsub.f32 %v2527_v42, %v2554_v44  ;;  %2380 = vmatmul.f32.vlgmr.msra.gmra.mxu1 %v4087_v63  ;;  %2592 = vmatpush.msra.mxu3 %v2591_v43  ;;  %v1589_v43 = vsel %vm1115_vm3, %v4042_v18, 0.0 }
 0x4a3   : > { %2496 = vmatpush.xpose.msrb.mxu1 %v4054_v55  ;;  %2624 = vmatpush.msra.mxu0 %v2588_v35 }
 0x4a4   : > { %v2595_v30 = vand.u32 4294901760, %v2594_v29 }
 0x4a5   : > { %2627 = vmatpush.msra.mxu0 %v2594_v29 }
 0x4a6   : > { %2226 = vmatmul.f32.vlgmr.msra.gmra.mxu2 %v4083_v39  ;;  %2257 = vmatmul.f32.gmra.mxu3 %v2097_v16  ;;  %v2596_v46 = vsub.f32 %v2594_v29, %v2595_v30 }
 0x4a7   : > { %2498 = vmatpush.xpose.msrb.mxu1 %v2334_v13  ;;  %2553 = vmatpush.msra.mxu2 %v2552_v26 }
 0x4a8   : > { %v2597_v55 = vand.u32 4294901760, %v2596_v46  ;;  %2349 = vmatmul.f32.gmra.mxu0 %v2348_v48 }
 0x4a9   : > { %2555 = vmatpush.msra.mxu2 %v2554_v44 }
 0x4aa   : > { %2384 = vmatmul.f32.gmra.mxu1 %v2344_v23  ;;  %2598 = vmatpush.msra.mxu3 %v2597_v55 }
 0x4ab   : > { %2654 = vmatpush.msra.mxu1 %v2552_v26 }
 0x4ad   : > { %2656 = vmatpush.msra.mxu1 %v2554_v44 }
 0x4ae   : > { %2230 = vmatmul.f32.gmra.mxu2 %v2097_v16  ;;  %2440 = vmatmul.f32.vlgmr.msrb.gmra.mxu3 %v2338_v21 }
 0x4af   : > { %2716 = vmatpush.msrb.mxu3 %v2552_v26 }
 0x4b0   : > { %2473 = vmatmul.f32.vlgmr.msrb.gmra.mxu0 %v4087_v63 }
 0x4b1   : > { %2718 = vmatpush.msrb.mxu3 %v2554_v44 }
 0x4b2   : > { %2500 = vmatmul.f32.vlgmr.msrb.gmra.mxu1 %v4087_v63 }
 0x4b6   : > { %2410 = vmatmul.f32.vlgmr.msrb.gmra.mxu2 %v4093_v4  ;;  %2446 = vmatmul.f32.gmra.mxu3 %v2346_v57  ;;  %v2053_v57 = vsel %vm1115_vm3, %v4078_v61, 0.0 }
 0x4b7   : > { %2687 = vmatpush.msrb.mxu2 %v2589_v40 }
 0x4b8   : > { %2477 = vmatmul.f32.gmra.mxu0 %v2344_v23 }
 0x4b9   : > { %2691 = vmatpush.msrb.mxu2 %v2595_v30 }
 0x4ba   : > { %2504 = vmatmul.f32.gmra.mxu1 %v2344_v23 }
 0x4be   : > { %2415 = vmatmul.f32.gmra.mxu2 %v2345_v27 }
 0x50d   : > { %v2164_v50 = vpop.f32.mrf.mxu0 }
 0x50f   : > { %v2194_v51 = vpop.f32.mrf.mxu1 }
 0x511   : > { %v2134_v49 = vpop.f32.mrf.mxu3 }
 0x515   : > { %v2169_v58 = vpop.f32.mrf.mxu0 }
 0x517   : > { %v2200_v60 = vpop.f32.mrf.mxu1 }
 0x519   : > { %v2095_v34 = vpop.f32.mrf.mxu2  ;;  %v2138_v53 = vpop.f32.mrf.mxu3 }
 0x51a   : > { %v2135_v52 = vadd.f32 %v2134_v49, %v2095_v34 }
 0x51c   : > { %v2165_v54 = vadd.f32 %v2164_v50, %v2135_v52 }
 0x51d   : > { %v2342_v63 = vpop.f32.mrf.mxu0 }
 0x51e   : > { %v2195_v59 = vadd.f32 %v2194_v51, %v2165_v54  ;;  %v1588_v51 = vpop.xlane.xlu2 %1587 }
 0x51f   : > { %v2381_v3 = vpop.f32.mrf.mxu1  ;;  %vm1799_vm5 = vweird.f32 %v1588_v51 }
 0x520   : > { %v2382_v16 = vadd.f32 %v2381_v3, %v2342_v63 }
 0x521   : > { %v2103_v62 = vpop.f32.mrf.mxu2  ;;  %v2254_v39 = vpop.f32.mrf.mxu3 }
 0x522   : > { %v2139_v15 = vadd.f32 %v2138_v53, %v2103_v62 }
 0x524   : > { %v2170_v47 = vadd.f32 %v2169_v58, %v2139_v15  ;;  %v2056_v58 = vsel %vm1115_vm3, %v4090_v7, 0.0 }
 0x525   : > { %v2350_v10 = vpop.f32.mrf.mxu0 }
 0x526   : > { %v2201_v6 = vadd.f32 %v2200_v60, %v2170_v47 }
 0x527   : > { %v2385_v13 = vpop.f32.mrf.mxu1 }
 0x528   : > { %v2386_v28 = vadd.f32 %v2385_v13, %v2350_v10 }
 0x529   : > { %v2227_v5 = vpop.f32.mrf.mxu2  ;;  %v2258_v4 = vpop.f32.mrf.mxu3 }
 0x52a   : > { %v2228_v8 = vadd.f32 %v2227_v5, %v2195_v59 }
 0x52c   : > { %v4111_v9 = vadd.f32 %v2254_v39, %v2228_v8  ;;  %v1128_v8 = vsel %vm1115_vm3, %v3984_v19, 0.0  ;;  %v1805_v19 = vand.u32 2147483648, %v1588_v51 }
 0x52d   : > { %v2474_v23 = vpop.f32.mrf.mxu0 }
 0x52f   : > { %v2501_v26 = vpop.f32.mrf.mxu1 }
 0x531   : > { %v2231_v11 = vpop.f32.mrf.mxu2  ;;  %v2441_v17 = vpop.f32.mrf.mxu3 }
 0x532   : > { %v2232_v12 = vadd.f32 %v2231_v11, %v2201_v6 }
 0x534   : > { %v4113_v14 = vadd.f32 %v2258_v4, %v2232_v12  ;;  %v1131_v4 = vsel %vm1115_vm3, %v3991_v25, 0.0  ;;  %v1803_v25 = vand.u32 2147483647, %v1588_v51 }
 0x535   : > { %v2478_v41 = vpop.f32.mrf.mxu0 }
 0x536   : > { %vm1804_vm8 = vcmp.eq.f32.partialorder %v1803_v25, 8.507059e+37 }
 0x537   : > { %v2505_v38 = vpop.f32.mrf.mxu1 }
 0x539   : > { %v2411_v20 = vpop.f32.mrf.mxu2  ;;  %v2447_v27 = vpop.f32.mrf.mxu3 }
 0x53a   : > { %v2412_v21 = vadd.f32 %v2411_v20, %v2382_v16 }
 0x53c   : > { %v2442_v24 = vadd.f32 %v2441_v17, %v2412_v21 }
 0x53e   : > { %v2475_v2 = vadd.f32 %v2474_v23, %v2442_v24 }
 0x540   : > { %v2502_v35 = vadd.f32 %v2501_v26, %v2475_v2 }
 0x541   : > { %v2416_v33 = vpop.f32.mrf.mxu2 }
 0x542   : > { %v2417_v36 = vadd.f32 %v2416_v33, %v2386_v28  ;;  %v2508_v0 = vsel %vm1115_vm3, %v2502_v35, -inf  ;;  %v1806_v28 = vor.u32 1.1754944e-38, %v1805_v19 }
 0x543   : > { %2509 = vmax.xlane.f32.xlu1 %v2508_v0 }
 0x544   : > { %v2448_v40 = vadd.f32 %v2447_v27, %v2417_v36 }
 0x546   : > { %v2479_v1 = vadd.f32 %v2478_v41, %v2448_v40 }
 0x548   : > { %v2506_v56 = vadd.f32 %v2505_v38, %v2479_v1 }
 0x54a   : > { %v2511_v42 = vsel %vm1115_vm3, %v2506_v56, -inf }
 0x54b   : > { %2054 = vadd.xlane.f32.xlu1 %v2053_v57  ;;  %2512 = vmax.xlane.f32.xlu0 %v2511_v42 }
 0x553   : > { %1590 = vadd.xlane.f32.xlu1 %v1589_v43 }
 0x5b6   : > { %v2510_v44 = vpop.xlane.xlu1 %2509 }
 0x5b7   : > { %v2514_v29 = vsub.f32 %v2502_v35, %v2510_v44 }
 0x5b9   : > { %v2516_v45 = vmul.f32 1.442695, %v2514_v29 }
 0x5bb   : > { %3321 = vpow2.f32 %v2516_v45 }
 0x5be   : > { %v2513_v30 = vpop.xlane.xlu0 %2512  ;;  %v4121_v55 = vpop.xlane.xlu1 %2054 }
 0x5bf   : > { %v2515_v46 = vsub.f32 %v2506_v56, %v2513_v30  ;;  %v2272_v33 = vand.u32 2147483648, %v4121_v55  ;;  %vm2266_vm9 = vweird.f32 %v4121_v55  ;;  %v2270_v0 = vand.u32 2147483647, %v4121_v55 }
 0x5c1   : > { %v3322_v48 = vpop.eup %3321  ;;  %v2518_v49 = vmul.f32 1.442695, %v2515_v46  ;;  %v2273_v1 = vor.u32 1.1754944e-38, %v2272_v33  ;;  %vm2271_vm13 = vcmp.eq.f32.partialorder %v2270_v0, 8.507059e+37 }
 0x5c2   : > { %v2533_v61 = vsel %vm1115_vm3, %v3322_v48, 0  ;;  %v2520_v50 = vsel %vm1115_vm3, %v3322_v48, 0.0 }
 0x5c3   : > { %v2556_v34 = vand.u32 4294901760, %v2533_v61  ;;  %3323 = vpow2.f32 %v2518_v49  ;;  %2521 = vadd.xlane.f32.xlu0 %v2520_v50 }
 0x5c4   : > { %3325 = vrcp.f32 %v1588_v51 }
 0x5c5   : > { %v2557_v18 = vsub.f32 %v2533_v61, %v2556_v34  ;;  %2600 = vmatmul.f32.vlgmr.msra.gmra.mxu3 %v2556_v34  ;;  %3327 = vrcp.f32 %v4121_v55 }
 0x5c6   : > { %v4130_v62 = vpop.xlane.xlu1 %1590 }
 0x5c7   : > { %2630 = vmatmul.f32.vlgmr.msra.gmra.mxu0 %v2557_v18  ;;  %v2558_v52 = vand.u32 4294901760, %v2557_v18  ;;  %3329 = vrcp.f32 %v4130_v62  ;;  %v1819_v40 = vand.u32 2147483648, %v4130_v62  ;;  %vm1813_vm12 = vweird.f32 %v4130_v62 }
 0x5c8   : > { %v1817_v56 = vand.u32 2147483647, %v4130_v62 }
 0x5c9   : > { %v3324_v53 = vpop.eup %3323  ;;  %2660 = vmatmul.f32.vlgmr.msra.gmra.mxu1 %v2558_v52  ;;  %v2559_v54 = vsub.f32 %v2557_v18, %v2558_v52  ;;  %v1820_v43 = vor.u32 1.1754944e-38, %v1819_v40 }
 0x5ca   : > { %v2523_v59 = vsel %vm1115_vm3, %v3324_v53, 0.0  ;;  %v2536_v60 = vsel %vm1115_vm3, %v3324_v53, 0  ;;  %v3326_v39 = vpop.eup %3325  ;;  %vm1818_vm15 = vcmp.eq.f32.partialorder %v1817_v56, 8.507059e+37 }
 0x5cb   : > { %2057 = vadd.xlane.f32.xlu0 %v2056_v58  ;;  %2524 = vadd.xlane.f32.xlu1 %v2523_v59  ;;  %v2560_v15 = vand.u32 4294901760, %v2559_v54  ;;  %v2564_v47 = vand.u32 4294901760, %v2536_v60  ;;  %v1795_v63 = vmul.f32 %v3326_v39, %v1588_v51  ;;  %v3328_v3 = vpop.eup %3327  ;;  %vm1800_vm4 = vweird.f32 %v3326_v39 }
 0x5cc   : > { %v2262_v13 = vmul.f32 %v3328_v3, %v4121_v55  ;;  %vm1801_vm6 = vmor %vm1799_vm5, %vm1800_vm4  ;;  %vm2267_vm7 = vweird.f32 %v3328_v3 }
 0x5cd   : > { %2561 = vmatmul.f32.vlgmr.msra.gmra.mxu2 %v2560_v15  ;;  %2604 = vmatmul.f32.gmra.mxu3 %v2564_v47  ;;  %v2565_v6 = vsub.f32 %v2536_v60, %v2564_v47  ;;  %v1796_v10 = vsub.f32 1.0, %v1795_v63  ;;  %v3330_v12 = vpop.eup %3329  ;;  %vm2268_vm10 = vmor %vm2266_vm9, %vm2267_vm7 }
 0x5ce   : > { %v1809_v17 = vmul.f32 %v3330_v12, %v4130_v62  ;;  %v2263_v20 = vsub.f32 1.0, %v2262_v13  ;;  %vm1814_vm11 = vweird.f32 %v3330_v12 }
 0x5cf   : > { %2635 = vmatmul.f32.gmra.mxu0 %v2565_v6  ;;  %v2566_v7 = vand.u32 4294901760, %v2565_v6  ;;  %v1797_v16 = vmul.f32 %v3326_v39, %v1796_v10  ;;  %vm1815_vm14 = vmor %vm1813_vm12, %vm1814_vm11 }
 0x5d0   : > { %v1810_v21 = vsub.f32 1.0, %v1809_v17  ;;  %v2264_v24 = vmul.f32 %v3328_v3, %v2263_v20 }
 0x5d1   : > { %2666 = vmatmul.f32.gmra.mxu1 %v2566_v7  ;;  %v2567_v5 = vsub.f32 %v2565_v6, %v2566_v7  ;;  %v1798_v23 = vadd.f32 %v3326_v39, %v1797_v16 }
 0x5d2   : > { %v1811_v26 = vmul.f32 %v3330_v12, %v1810_v21  ;;  %v2265_v35 = vadd.f32 %v3328_v3, %v2264_v24 }
 0x5d3   : > { %1129 = vadd.xlane.f32.xlu0 %v1128_v8  ;;  %1132 = vadd.xlane.f32.xlu1 %v1131_v4  ;;  %v2568_v11 = vand.u32 4294901760, %v2567_v5  ;;  %v1802_v2 = vsel %vm1801_vm6, %v3326_v39, %v1798_v23 }
 0x5d4   : > { %v1807_v36 = vsel %vm1804_vm8, %v1806_v28, %v1802_v2  ;;  %v1812_v27 = vadd.f32 %v3330_v12, %v1811_v26  ;;  %v2269_v41 = vsel %vm2268_vm10, %v3328_v3, %v2265_v35 }
 0x5d5   : > { %2569 = vmatmul.f32.gmra.mxu2 %v2568_v11  ;;  %2720 = vmatmul.f32.vlgmr.msrb.gmra.mxu3 %v2556_v34  ;;  %v1822_v38 = vmul.f32 %v1807_v36, %v4064_v22  ;;  %v2274_v57 = vsel %vm2271_vm13, %v2273_v1, %v2269_v41 }
 0x5d6   : > { %v1816_v42 = vsel %vm1815_vm14, %v3330_v12, %v1812_v27  ;;  %v2289_v44 = vmul.f32 %v2274_v57, %v4111_v9  ;;  %vm1832_vm14 = vcmask 130112  }
 0x5d7   : > { %v1821_v29 = vsel %vm1818_vm15, %v1820_v43, %v1816_v42  ;;  %vm2299_vm15 = vcmask 195712  }
 0x5d8   : > { %v1823_v45 = vmul.f32 %v1821_v29, %v4066_v32 }
 0x5dd   : > { %2693 = vmatmul.f32.vlgmr.msrb.gmra.mxu2 %v2556_v34  ;;  %2724 = vmatmul.f32.gmra.mxu3 %v2564_v47 }
 0x5e5   : > { %2697 = vmatmul.f32.gmra.mxu2 %v2564_v47 }
 0x5e7   : > { %1826 = vrot.lane.b32.xlu0 %v1822_v38, %s3599_s26 }
 0x5ec   : > { %2293 = vrot.lane.b32.xlu1 %v2289_v44, %s3600_s25 }
 0x5ef   : > { %1828 = vrot.lane.b32.xlu0 %v1823_v45, %s3599_s26 }
 0x636   : > { %v4151_v22 = vpop.xlane.xlu0 %2521 }
 0x637   : > { %v2739_v38 = vand.u32 2147483648, %v4151_v22  ;;  %v2737_v42 = vand.u32 2147483647, %v4151_v22 }
 0x63e   : > { %v4153_v30 = vpop.xlane.xlu1 %2524  ;;  %v2058_v46 = vpop.xlane.xlu0 %2057 }
 0x63f   : > { %3331 = vrcp.f32 %v2058_v46  ;;  %v2286_v50 = vand.u32 2147483648, %v2058_v46  ;;  %v2284_v32 = vand.u32 2147483647, %v2058_v46  ;;  %vm2280_vm3 = vweird.f32 %v2058_v46 }
 0x640   : > { %3333 = vrcp.f32 %v4151_v22 }
 0x641   : > { %v2287_v58 = vor.u32 1.1754944e-38, %v2286_v50  ;;  %vm2285_vm5 = vcmp.eq.f32.partialorder %v2284_v32, 8.507059e+37  ;;  %v2753_v32 = vand.u32 2147483648, %v4153_v30 }
 0x644   : > { %v2631_v26 = vpop.f32.mrf.mxu0 }
 0x645   : > { %v3332_v48 = vpop.eup %3331 }
 0x646   : > { %v1133_v55 = vpop.xlane.xlu1 %1132  ;;  %v1130_v49 = vpop.xlane.xlu0 %1129  ;;  %v2276_v9 = vmul.f32 %v3332_v48, %v2058_v46  ;;  %vm2281_vm1 = vweird.f32 %v3332_v48 }
 0x647   : > { %3335 = vrcp.f32 %v1133_v55  ;;  %v4156_v34 = vpop.eup %3333  ;;  %vm2282_vm4 = vmor %vm2280_vm3, %vm2281_vm1  ;;  %v1361_v63 = vand.u32 2147483648, %v1133_v55  ;;  %v1359_v8 = vand.u32 2147483647, %v1133_v55  ;;  %v1347_v4 = vand.u32 2147483648, %v1130_v49  ;;  %v2661_v41 = vpop.f32.mrf.mxu1 }
 0x648   : > { %3337 = vrcp.f32 %v1130_v49  ;;  %v2277_v61 = vsub.f32 1.0, %v2276_v9  ;;  %v2601_v18 = vpop.f32.mrf.mxu3  ;;  %v2729_v6 = vmul.f32 %v4156_v34, %v4151_v22  ;;  %v1345_v11 = vand.u32 2147483647, %v1130_v49 }
 0x649   : > { %3339 = vrcp.f32 %v4153_v30  ;;  %vm1355_vm8 = vweird.f32 %v1133_v55  ;;  %v1362_v16 = vor.u32 1.1754944e-38, %v1361_v63  ;;  %vm1341_vm10 = vweird.f32 %v1130_v49  ;;  %v2773_v63 = vld [vmem:[#allocation12 + $0x10] sm:$0xff] }
 0x64a   : > { %v2278_v51 = vmul.f32 %v3332_v48, %v2277_v61  ;;  %v2730_v13 = vsub.f32 1.0, %v2729_v6  ;;  %vm1360_vm11 = vcmp.eq.f32.partialorder %v1359_v8, 8.507059e+37  ;;  %vm1346_vm13 = vcmp.eq.f32.partialorder %v1345_v11, 8.507059e+37 }
 0x64b   : > { %vm2734_vm1 = vweird.f32 %v4156_v34  ;;  %vm2733_vm3 = vweird.f32 %v4151_v22 }
 0x64c   : > { %v2279_v53 = vadd.f32 %v3332_v48, %v2278_v51  ;;  %v2731_v33 = vmul.f32 %v4156_v34, %v2730_v13 }
 0x64d   : > { %v3336_v52 = vpop.eup %3335 }
 0x64e   : > { %v3338_v54 = vpop.eup %3337  ;;  %v1351_v59 = vmul.f32 %v3336_v52, %v1133_v55  ;;  %v2283_v62 = vsel %vm2282_vm4, %v3332_v48, %v2279_v53  ;;  %vm1356_vm6 = vweird.f32 %v3336_v52  ;;  %v2740_v55 = vor.u32 1.1754944e-38, %v2739_v38 }
 0x64f   : > { %v1337_v60 = vmul.f32 %v3338_v54, %v1130_v49  ;;  %v2288_v39 = vsel %vm2285_vm5, %v2287_v58, %v2283_v62  ;;  %vm1342_vm7 = vweird.f32 %v3338_v54  ;;  %vm1357_vm9 = vmor %vm1355_vm8, %vm1356_vm6  ;;  %v4163_v20 = vpop.eup %3339  ;;  %v2636_v49 = vpop.f32.mrf.mxu0  ;;  %vm2738_vm4 = vcmp.eq.f32.partialorder %v2737_v42, 8.507059e+37 }
 0x650   : > { %v1352_v15 = vsub.f32 1.0, %v1351_v59  ;;  %v2562_v47 = vpop.f32.mrf.mxu2  ;;  %v2290_v3 = vmul.f32 %v2288_v39, %v4113_v14  ;;  %vm1343_vm12 = vmor %vm1341_vm10, %vm1342_vm7  ;;  %v1348_v14 = vor.u32 1.1754944e-38, %v1347_v4  ;;  %v2605_v23 = vpop.f32.mrf.mxu3  ;;  %v2743_v36 = vmul.f32 %v4163_v20, %v4153_v30  ;;  %v2774_v39 = vld [vmem:[#allocation12 + $0x18] sm:$0xff] }
 0x651   : > { %v1338_v7 = vsub.f32 1.0, %v1337_v60  ;;  %v2602_v25 = vadd.f32 %v2601_v18, %v2562_v47  ;;  %vm2748_vm5 = vweird.f32 %v4163_v20  ;;  %v2667_v18 = vpop.f32.mrf.mxu1  ;;  %vm2747_vm6 = vweird.f32 %v4153_v30 }
 0x652   : > { %v1353_v5 = vmul.f32 %v3336_v52, %v1352_v15  ;;  %2295 = vrot.lane.b32.xlu1 %v2290_v3, %s3600_s25  ;;  %v2744_v1 = vsub.f32 1.0, %v2743_v36  ;;  %vm2749_vm7 = vmor %vm2747_vm6, %vm2748_vm5  ;;  %v2754_v59 = vor.u32 1.1754944e-38, %v2753_v32  ;;  %v2797_v6 = vand.u32 4294901760, %v2774_v39 }
 0x653   : > { %v1339_v10 = vmul.f32 %v3338_v54, %v1338_v7  ;;  %v2632_v40 = vadd.f32 %v2631_v26, %v2602_v25  ;;  %v2799_v3 = vand.u32 4294901760, %v2773_v63 }
 0x654   : > { %v1354_v12 = vadd.f32 %v3336_v52, %v1353_v5  ;;  %v2745_v29 = vmul.f32 %v4163_v20, %v2744_v1  ;;  %v2835_v7 = vsub.f32 %v2774_v39, %v2797_v6  ;;  %2915 = vmatpush.msra.mxu3 %v2797_v6  ;;  %2798 = vmatpush.msrb.mxu0 %v2797_v6 }
 0x655   : > { %v1340_v17 = vadd.f32 %v3338_v54, %v1339_v10  ;;  %v2662_v57 = vadd.f32 %v2661_v41, %v2632_v40  ;;  %v2841_v8 = vsub.f32 %v2773_v63, %v2799_v3  ;;  %v2771_v10 = vld [vmem:[#allocation12] sm:$0xff] }
 0x656   : > { %v1358_v21 = vsel %vm1357_vm9, %v3336_v52, %v1354_v12  ;;  %v2746_v22 = vadd.f32 %v4163_v20, %v2745_v29  ;;  %v2751_v52 = vand.u32 2147483647, %v4153_v30  ;;  %v2772_v30 = vld [vmem:[#allocation12 + $0x8] sm:$0xff]  ;;  %v2836_v5 = vand.u32 4294901760, %v2835_v7  ;;  %2881 = vmatpush.msra.mxu2 %v2835_v7  ;;  %2917 = vmatpush.msra.mxu3 %v2799_v3 }
 0x657   : > { %v1363_v19 = vsel %vm1360_vm11, %v1362_v16, %v1358_v21  ;;  %v1344_v24 = vsel %vm1343_vm12, %v3338_v54, %v1340_v17  ;;  %v2801_v4 = vand.u32 4294901760, %v2772_v30  ;;  %2800 = vmatpush.msrb.mxu0 %v2799_v3  ;;  %v2842_v12 = vand.u32 4294901760, %v2841_v8 }
 0x658   : > { %v1349_v2 = vsel %vm1346_vm13, %v1348_v14, %v1344_v24  ;;  %v2570_v28 = vpop.f32.mrf.mxu2  ;;  %v1365_v35 = vmul.f32 %v1363_v19, %v4017_v37  ;;  %v2732_v37 = vadd.f32 %v4156_v34, %v2731_v33  ;;  %v2721_v43 = vpop.f32.mrf.mxu3  ;;  %v2750_v58 = vsel %vm2749_vm7, %v4163_v20, %v2746_v22  ;;  %2884 = vmatpush.msra.mxu2 %v2841_v8 }
 0x659   : > { %v1364_v0 = vmul.f32 %v1349_v2, %v4015_v31  ;;  %v1827_v27 = vpop.permute.xlu0 %1826  ;;  %v2606_v31 = vadd.f32 %v2605_v23, %v2570_v28  ;;  %vm2752_vm8 = vcmp.eq.f32.partialorder %v2751_v52, 8.507059e+37  ;;  %v2837_v11 = vsub.f32 %v2835_v7, %v2836_v5  ;;  %2919 = vmatpush.msra.mxu3 %v2801_v4  ;;  %2802 = vmatpush.msrb.mxu0 %v2801_v4 }
 0x65a   : > { %1367 = vst.msk [vmem:[#allocation3 + $0x8] sm:$0xff] %vm912_vm2, %v1365_v35  ;;  %v2755_v15 = vsel %vm2752_vm8, %v2754_v59, %v2750_v58  ;;  %v2847_v13 = vsub.f32 %v2772_v30, %v2801_v4  ;;  %v2803_v16 = vand.u32 4294901760, %v2771_v10  ;;  %v2843_v20 = vsub.f32 %v2841_v8, %v2842_v12 }
 0x65b   : > { %1366 = vst.msk [vmem:[#allocation3] sm:$0xff] %vm912_vm2, %v1364_v0  ;;  %vm2735_vm2 = vmor %vm2733_vm3, %vm2734_vm1  ;;  %v2637_v9 = vadd.f32 %v2636_v49, %v2606_v31  ;;  %v2838_v17 = vand.u32 4294901760, %v2837_v11  ;;  %vm2766_vm9 = vcmask 261312  }
 0x65c   : > { %1833 = vst.msk [vmem:[#allocation3] sm:$0xff] %vm1832_vm14, %v1827_v27  ;;  %v2736_v48 = vsel %vm2735_vm2, %v4156_v34, %v2732_v37  ;;  %v2848_v21 = vand.u32 4294901760, %v2847_v13  ;;  %v2853_v14 = vsub.f32 %v2771_v10, %v2803_v16  ;;  %2887 = vmatpush.msra.mxu2 %v2847_v13  ;;  %2921 = vmatpush.msra.mxu3 %v2803_v16  ;;  %v2844_v23 = vand.u32 4294901760, %v2843_v20 }
 0x65d   : > { %v2741_v50 = vsel %vm2738_vm4, %v2740_v55, %v2736_v48  ;;  %v2668_v34 = vadd.f32 %v2667_v18, %v2637_v9  ;;  %2804 = vmatpush.msrb.mxu0 %v2803_v16  ;;  %2839 = vmatpush.msrb.mxu1 %v2838_v17 }
 0x65e   : > { %v2294_v56 = vpop.permute.xlu1 %2293  ;;  %v2849_v19 = vsub.f32 %v2847_v13, %v2848_v21  ;;  %v2854_v24 = vand.u32 4294901760, %v2853_v14  ;;  %2890 = vmatpush.msra.mxu2 %v2853_v14 }
 0x65f   : > { %2300 = vst.msk [vmem:[#allocation3] sm:$0xff] %vm2299_vm15, %v2294_v56  ;;  %2950 = vmatpush.msra.mxu0 %v2836_v5  ;;  %2845 = vmatpush.msrb.mxu1 %v2844_v23 }
 0x660   : > { %v2694_v44 = vpop.f32.mrf.mxu2  ;;  %v2725_v60 = vpop.f32.mrf.mxu3  ;;  %v2850_v25 = vand.u32 4294901760, %v2849_v19  ;;  %v2855_v26 = vsub.f32 %v2853_v14, %v2854_v24 }
 0x661   : > { %v2695_v45 = vadd.f32 %v2694_v44, %v2662_v57  ;;  %v1829_v46 = vpop.permute.xlu0 %1828  ;;  %2954 = vmatpush.msra.mxu0 %v2842_v12 }
 0x662   : > { %1834 = vst.msk [vmem:[#allocation3 + $0x8] sm:$0xff] %vm1832_vm14, %v1829_v46  ;;  %2851 = vmatpush.msrb.mxu1 %v2850_v25  ;;  %v2856_v2 = vand.u32 4294901760, %v2855_v26 }
 0x663   : > { %v2722_v61 = vadd.f32 %v2721_v43, %v2695_v45  ;;  %2958 = vmatpush.msra.mxu0 %v2848_v21  ;;  %v3308_v45 = vld [vmem:[%s4245_s7] ss:$0 sm:$0xff] }
 0x664   : > { %2857 = vmatpush.msrb.mxu1 %v2856_v2 }
 0x665   : > { %v2756_v51 = vmul.f32 %v2741_v50, %v2722_v61  ;;  %2962 = vmatpush.msra.mxu0 %v2854_v24 }
 0x666   : > { %2985 = vmatpush.msra.mxu1 %v2797_v6 }
 0x667   : > { %2760 = vrot.lane.b32.xlu2 %v2756_v51, %s3601_s6 }
 0x668   : > { %v2698_v53 = vpop.f32.mrf.mxu2  ;;  %2987 = vmatpush.msra.mxu1 %v2799_v3 }
 0x669   : > { %v2699_v54 = vadd.f32 %v2698_v53, %v2668_v34 }
 0x66a   : > { %2989 = vmatpush.msra.mxu1 %v2801_v4 }
 0x66b   : > { %v2726_v62 = vadd.f32 %v2725_v60, %v2699_v54 }
 0x66c   : > { %2991 = vmatpush.msra.mxu1 %v2803_v16 }
 0x66d   : > { %v2757_v47 = vmul.f32 %v2755_v15, %v2726_v62 }
 0x66f   : > { %2762 = vrot.lane.b32.xlu0 %v2757_v47, %s3601_s6 }
 0x6c1   : > { %v2761_v28 = vpop.permute.xlu2 %2760 }
 0x6c2   : > { %2767 = vst.msk [vmem:[#allocation3] sm:$0xff] %vm2766_vm9, %v2761_v28 }
 0x6c4   : > { %v2296_v35 = vpop.permute.xlu1 %2295 }
 0x6c5   : > { %2301 = vst.msk [vmem:[#allocation3 + $0x8] sm:$0xff] %vm2299_vm15, %v2296_v35 }
 0x6c9   : > { %v2769_v33 = vld [vmem:[#allocation3] sm:$0xff] }
 0x6ca   : > { %v2780_v36 = vsel %vm451_vm0, %v2769_v33, 0 }
 0x6cb   : > { %v2805_v0 = vand.u32 4294901760, %v2780_v36 }
 0x6cd   : > { %2859 = vmatmul.f32.vlgmr.msrb.gmra.mxu1 %v2805_v0  ;;  %v2806_v27 = vsub.f32 %v2780_v36, %v2805_v0 }
 0x6cf   : > { %2893 = vmatmul.f32.vlgmr.msra.gmra.mxu2 %v2806_v27  ;;  %v2807_v40 = vand.u32 4294901760, %v2806_v27 }
 0x6d1   : > { %2925 = vmatmul.f32.vlgmr.msra.gmra.mxu3 %v2807_v40  ;;  %v2808_v41 = vsub.f32 %v2806_v27, %v2807_v40 }
 0x6d3   : > { %v2809_v1 = vand.u32 4294901760, %v2808_v41 }
 0x6d5   : > { %2810 = vmatmul.f32.vlgmr.msrb.gmra.mxu0 %v2809_v1 }
 0x6e1   : > { %v2763_v37 = vpop.permute.xlu0 %2762 }
 0x6e2   : > { %2768 = vst.msk [vmem:[#allocation3 + $0x8] sm:$0xff] %vm2766_vm9, %v2763_v37 }
 0x6e9   : > { %v2770_v38 = vld [vmem:[#allocation3 + $0x8] sm:$0xff] }
 0x6ea   : > { %v2783_v56 = vsel %vm451_vm0, %v2770_v38, 0 }
 0x6eb   : > { %v2813_v31 = vand.u32 4294901760, %v2783_v56 }
 0x6ed   : > { %2863 = vmatmul.f32.gmra.mxu1 %v2813_v31  ;;  %v2814_v57 = vsub.f32 %v2783_v56, %v2813_v31 }
 0x6ef   : > { %2898 = vmatmul.f32.gmra.mxu2 %v2814_v57  ;;  %v2815_v42 = vand.u32 4294901760, %v2814_v57 }
 0x6f1   : > { %2931 = vmatmul.f32.gmra.mxu3 %v2815_v42  ;;  %v2816_v43 = vsub.f32 %v2814_v57, %v2815_v42 }
 0x6f3   : > { %v2817_v44 = vand.u32 4294901760, %v2816_v43 }
 0x6f5   : > { %2818 = vmatmul.f32.gmra.mxu0 %v2817_v44  ;;  %2993 = vmatmul.f32.vlgmr.msra.gmra.mxu1 %v2805_v0 }
 0x6fd   : > { %2964 = vmatmul.f32.vlgmr.msra.gmra.mxu0 %v2805_v0  ;;  %2997 = vmatmul.f32.gmra.mxu1 %v2813_v31 }
 0x705   : > { %2968 = vmatmul.f32.gmra.mxu0 %v2813_v31 }
 0x74a   : > { %v2860_v29 = vpop.f32.mrf.mxu1 }
 0x752   : > { %v2811_v46 = vpop.f32.mrf.mxu0  ;;  %v2894_v61 = vpop.f32.mrf.mxu2 }
 0x753   : > { %v2812_v48 = vadd.f32 %v3308_v45, %v2811_v46 }
 0x754   : > { %v2926_v22 = vpop.f32.mrf.mxu3 }
 0x755   : > { %v2861_v49 = vadd.f32 %v2860_v29, %v2812_v48 }
 0x757   : > { %v2895_v50 = vadd.f32 %v2894_v61, %v2861_v49 }
 0x759   : > { %v2927_v32 = vadd.f32 %v2926_v22, %v2895_v50 }
 0x76a   : > { %v2864_v55 = vpop.f32.mrf.mxu1 }
 0x772   : > { %v2819_v9 = vpop.f32.mrf.mxu0  ;;  %v2994_v34 = vpop.f32.mrf.mxu1 }
 0x773   : > { %v2820_v51 = vadd.f32 %v3308_v45, %v2819_v9  ;;  %v2899_v54 = vpop.f32.mrf.mxu2 }
 0x774   : > { %v2932_v60 = vpop.f32.mrf.mxu3 }
 0x775   : > { %v2865_v18 = vadd.f32 %v2864_v55, %v2820_v51 }
 0x777   : > { %v2900_v58 = vadd.f32 %v2899_v54, %v2865_v18 }
 0x779   : > { %v2933_v62 = vadd.f32 %v2932_v60, %v2900_v58 }
 0x77a   : > { %v2965_v52 = vpop.f32.mrf.mxu0  ;;  %v2998_v39 = vpop.f32.mrf.mxu1 }
 0x77b   : > { %v2966_v53 = vadd.f32 %v2965_v52, %v2927_v32 }
 0x77d   : > { %v2995_v59 = vadd.f32 %v2994_v34, %v2966_v53 }
 0x77f   : > { %3001 = vst.msk [vmem:[%s434_s18] sm:$0xff] %vm451_vm0, %v2995_v59 }
 0x782   : > { %v2969_v15 = vpop.f32.mrf.mxu0 }
 0x783   : > { %v2970_v47 = vadd.f32 %v2969_v15, %v2933_v62 }
 0x785   : > { %v2999_v6 = vadd.f32 %v2998_v39, %v2970_v47 }
 0x787   : > { %3002 = vst.msk [vmem:[%s434_s18 + $0x8] sm:$0xff] %vm451_vm0, %v2999_v6 }
 0x788   : > { %3518 = shalt.err (!%p3515_p0)
}
 0x789   : > { %s3602_s14 = smov 128  }
 0x78a   : > { %3211 = dma.vmem_to_hbm [thread:$0]  (%p3748_p5), %s3019_s2, 256, %s3021_s15, %s3004_s30, %s3602_s14, %s3602_s14, %s3599_s26  }
 0x78b PF: > { %s4274_s25 = sld [smem:[#allocation19_spill]]  ;;  %p3231_p3 = pnand %p3165_p11, %p3693_p6 }
 0x78d   : > { %p3232_p7 = pneg %p3231_p3 }
 0x791   : > { %s3035_s17 = sand.u32 1, %s4274_s25  }
 0x792   : > { %s3036_s27 = scalar_lea.sflag [#allocation6], %s3035_s17 }
 0x793   : > { %3560 = dma.done.wait (%p3232_p7), %s3036_s27, 256  }
 0x794   : > { %3562 = vsyncadd (%p3232_p7), %s3036_s27, 4294967040  ;;  %s28_s10 = sadd.s32 1, %s3585_s10   ;;  %s4276_s21 = sld [smem:[#allocation23_spill]] }
 0x795   : > { %p25_p9 = scmp.ge.s32.totalorder %s28_s10, 4   ;;  %s4277_s30 = sld [smem:[#allocation20_spill]] }
 0x796   : > { %s4278_s9 = sld [smem:[#allocation22_spill]]  ;;  %s4279_s27 = smov %s3569_s28 }
 0x797   : > { %s4280_s28 = smov %s3573_s29  ;;  %27 = sbr.rel (!%p25_p9) target bundleno = 13 (0xd), region = 126 }
 0x79a   : > { %s4281_s29 = smov %s4276_s21 }
 0x79c   :  { %3042 = vsyncpa [#allocation5], 1 }
 0x79d   :  { %3044 = vsyncpa [#allocation5 + $0x1], 1 }
 0x79e   :  { %3045 = vsyncpa [#allocation8], 1 }
 0x79f   :  { %3047 = vsyncpa [#allocation8 + $0x1], 1 }
 0x7a0   :  { %3048 = vsyncpa [#allocation11], 1 }
 0x7a1   :  { %3049 = vsyncpa [#allocation6], 1 }
 0x7a2   :  { %3051 = vsyncpa [#allocation6 + $0x1], 1 }

</bundles_post_ra>
